<compile_context>
chip_gen: v6e
topology: v6e:2x2x1
jax: 0.10.0
libtpu: 0.0.40
codegen_flags: <defaults>
</compile_context>

<pallas_src>
import jax
import jax.numpy as jnp
from jax.experimental import pallas as pl
from jax.experimental.pallas import tpu as pltpu


# ----------------------------- Pallas kernels -------------------------------
def _invstep_kernel(x_ref, w_ref, b_ref, o_ref):
    # Fused ActNorm + InvConv:  y = W' @ x + b'   with x, y of shape (C, H*W).
    o_ref[...] = (
        jnp.dot(w_ref[...], x_ref[...], preferred_element_type=jnp.float32)
        + b_ref[...]
    )


def _coupling_nn1_kernel(col_ref, w_in_ref, w_mid_ref, b_mid_ref,
                         so_ref, sho_ref, o_ref):
    # h1 = relu(conv3x3(in_norm(x_id)))          (conv as matmul on im2col)
    h1 = jnp.maximum(
        jnp.dot(w_in_ref[...], col_ref[...], preferred_element_type=jnp.float32),
        0.0,
    )
    # h2 = relu(mid_conv(mid_norm(h1)))          (BN folded into the 1x1 conv)
    h2 = jnp.maximum(
        jnp.dot(w_mid_ref[...], h1, preferred_element_type=jnp.float32)
        + b_mid_ref[...],
        0.0,
    )
    # out_norm affine applied in-kernel (before the wrapper zero-pads it)
    o_ref[...] = h2 * so_ref[...] + sho_ref[...]


def _coupling_out_kernel(col_ref, xc_ref, ws_ref, wt_ref, bs_ref, bt_ref,
                         scale_ref, o_ref, ldj_ref):
    # st = out_conv(pad(h2n)); s/t channels pre-split at the weight matrix.
    s_raw = (
        jnp.dot(ws_ref[...], col_ref[...], preferred_element_type=jnp.float32)
        + bs_ref[...]
    )
    t = (
        jnp.dot(wt_ref[...], col_ref[...], preferred_element_type=jnp.float32)
        + bt_ref[...]
    )
    s = scale_ref[...] * jnp.tanh(s_raw)
    o_ref[...] = (xc_ref[...] + t) * jnp.exp(s)          # lane-dense (half, H*W)
    ldj_ref[...] = jnp.sum(jnp.sum(s, axis=1, keepdims=True),
                           axis=0, keepdims=True)        # per-sample log-det


# ----------------------------- pallas wrappers -------------------------------
def _cparams():
    return pltpu.CompilerParams(dimension_semantics=("parallel",))


def actnorm_invconv(x_mat, w_fold, b_fold):
    b, c, hw = x_mat.shape
    return pl.pallas_call(
        _invstep_kernel,
        out_shape=jax.ShapeDtypeStruct((b, c, hw), jnp.float32),
        grid=(b,),
        in_specs=[
            pl.BlockSpec((None, c, hw), lambda i: (i, 0, 0)),
            pl.BlockSpec((c, c), lambda i: (0, 0)),
            pl.BlockSpec((c, 1), lambda i: (0, 0)),
        ],
        out_specs=pl.BlockSpec((None, c, hw), lambda i: (i, 0, 0)),
        compiler_params=_cparams(),
    )(x_mat, w_fold, b_fold)


def coupling_nn1(col1, w_in, w_mid_f, b_mid_f, so, sho):
    b, kc, hw = col1.shape
    mid = w_in.shape[0]
    return pl.pallas_call(
        _coupling_nn1_kernel,
        out_shape=jax.ShapeDtypeStruct((b, mid, hw), jnp.float32),
        grid=(b,),
        in_specs=[
            pl.BlockSpec((None, kc, hw), lambda i: (i, 0, 0)),
            pl.BlockSpec((mid, kc), lambda i: (0, 0)),
            pl.BlockSpec((mid, mid), lambda i: (0, 0)),
            pl.BlockSpec((mid, 1), lambda i: (0, 0)),
            pl.BlockSpec((mid, 1), lambda i: (0, 0)),
            pl.BlockSpec((mid, 1), lambda i: (0, 0)),
        ],
        out_specs=pl.BlockSpec((None, mid, hw), lambda i: (i, 0, 0)),
        compiler_params=_cparams(),
    )(col1, w_in, w_mid_f, b_mid_f, so, sho)


def coupling_out(col2, x_change, ws, wt, bs, bt, scale):
    b, kc, hw = col2.shape
    half = x_change.shape[1]
    return pl.pallas_call(
        _coupling_out_kernel,
        out_shape=(
            jax.ShapeDtypeStruct((b, half, hw), jnp.float32),
            jax.ShapeDtypeStruct((b, 1, 1), jnp.float32),
        ),
        grid=(b,),
        in_specs=[
            pl.BlockSpec((None, kc, hw), lambda i: (i, 0, 0)),
            pl.BlockSpec((None, half, hw), lambda i: (i, 0, 0)),
            pl.BlockSpec((half, kc), lambda i: (0, 0)),
            pl.BlockSpec((half, kc), lambda i: (0, 0)),
            pl.BlockSpec((half, 1), lambda i: (0, 0)),
            pl.BlockSpec((half, 1), lambda i: (0, 0)),
            pl.BlockSpec((half, 1), lambda i: (0, 0)),
        ],
        out_specs=(
            pl.BlockSpec((None, half, hw), lambda i: (i, 0, 0)),
            pl.BlockSpec((None, 1, 1), lambda i: (i, 0, 0)),
        ),
        compiler_params=_cparams(),
    )(col2, x_change, ws, wt, bs, bt, scale)


# ------------------------------ layout glue ----------------------------------
def im2col3x3(x):
    # NCHW (B, C, H, W) -> (B, 9*C, H*W), zero-padding of 1 (XLA wrapper glue).
    b, c, h, w = x.shape
    xp = jnp.pad(x, ((0, 0), (0, 0), (1, 1), (1, 1)))
    cols = [xp[:, :, dy:dy + h, dx:dx + w] for dy in range(3) for dx in range(3)]
    return jnp.concatenate(cols, axis=1).reshape(b, 9 * c, h * w)


def conv3x3_to_mat(w):
    # (Cout, Cin, 3, 3) -> (Cout, 9*Cin), matching im2col3x3's column ordering.
    cout, cin = w.shape[0], w.shape[1]
    return jnp.transpose(w, (0, 2, 3, 1)).reshape(cout, 9 * cin)


def squeeze_fwd(x):  # exactly the torch squeeze(forward) channel ordering
    b, c, h, w = x.shape
    x = x.reshape(b, c, h // 2, 2, w // 2, 2)
    x = jnp.transpose(x, (0, 1, 3, 5, 2, 4))
    return x.reshape(b, c * 4, h // 2, w // 2)


def squeeze_rev(x):
    b, c, h, w = x.shape
    x = x.reshape(b, c // 4, 2, 2, h, w)
    x = jnp.transpose(x, (0, 1, 4, 2, 5, 3))
    return x.reshape(b, c // 4, h * 2, w * 2)


def bn_scale_shift(p):  # eval-mode BatchNorm2d as per-channel affine
    inv = 1.0 / jnp.sqrt(p["var"] + 1e-5)
    s = p["gamma"] * inv
    return s, p["beta"] - p["mean"] * s


# ----------------------------- Glow components -------------------------------
def flow_step_forward(x, sldj, p):
    b, c, h, w = x.shape
    hw = h * w
    half = c // 2
    an, ic, cp = p["actnorm"], p["invconv"], p["coupling"]

    # --- ActNorm + InvConv fused: y = W_inv @ ((x + bias) * exp(logs)) -------
    e_logs = jnp.exp(an["logs"])
    w_fold = ic["weight"] * e_logs[None, :]                      # (c, c)
    b_fold = (ic["weight"] @ (e_logs * an["bias"]))[:, None]     # (c, 1)
    x = actnorm_invconv(x.reshape(b, c, hw), w_fold, b_fold).reshape(b, c, h, w)
    sldj = sldj + (jnp.sum(an["logs"]) + ic["logdet"]) * hw

    # --- Coupling -------------------------------------------------------------
    nn = cp["nn"]
    mid = nn["in_conv_w"].shape[0]
    x_change, x_id = x[:, :half], x[:, half:]

    # in_norm applied BEFORE zero padding (keeps boundary semantics exact)
    s_in, sh_in = bn_scale_shift(nn["in_norm"])
    x_idn = x_id * s_in[None, :, None, None] + sh_in[None, :, None, None]
    col1 = im2col3x3(x_idn)                                      # (b, 9*half, hw)

    w_in = conv3x3_to_mat(nn["in_conv_w"])                       # (mid, 9*half)
    s_m, sh_m = bn_scale_shift(nn["mid_norm"])                   # exact fold (1x1)
    w_mid = nn["mid_conv_w"].reshape(mid, mid)
    w_mid_f = w_mid * s_m[None, :]
    b_mid_f = (w_mid @ sh_m)[:, None]
    s_o, sh_o = bn_scale_shift(nn["out_norm"])                   # applied in K1
    h2n = coupling_nn1(col1, w_in, w_mid_f, b_mid_f,
                       s_o[:, None], sh_o[:, None])              # (b, mid, hw)

    col2 = im2col3x3(h2n.reshape(b, mid, h, w))                  # (b, 9*mid, hw)
    w_out = conv3x3_to_mat(nn["out_conv_w"])                     # (2*half, 9*mid)
    # pre-split the interleaved s/t output channels (st[:,0::2] / st[:,1::2])
    ws, wt = w_out[0::2], w_out[1::2]
    bs, bt = nn["out_conv_b"][0::2, None], nn["out_conv_b"][1::2, None]
    xc_new, ldj = coupling_out(col2, x_change.reshape(b, half, hw),
                               ws, wt, bs, bt, cp["scale"][:, None])
    sldj = sldj + ldj[:, 0, 0]
    x = jnp.concatenate([xc_new.reshape(b, half, h, w), x_id], axis=1)
    return x, sldj


def glow_forward(x, sldj, params, hint_idx):
    hint_feature = []
    for idx, sp in enumerate(params["steps"]):
        x, sldj = flow_step_forward(x, sldj, sp)
        if idx in hint_idx:
            hint_feature.append(x)
    if params["next"] is not None:
        x = squeeze_fwd(x)
        c = x.shape[1]
        x, x_split = x[:, : c // 2], x[:, c // 2:]
        x, sldj, f = glow_forward(x, sldj, params["next"], hint_idx)
        hint_feature.extend(f)
        x = jnp.concatenate([x, x_split], axis=1)
        x = squeeze_rev(x)
    return x, sldj, hint_feature


# --------------------------- parameter construction --------------------------
def _bn_params(key, c):
    k1, k2, k3, k4 = jax.random.split(key, 4)
    return {
        "gamma": 1.0 + 0.1 * jax.random.normal(k1, (c,), jnp.float32),
        "beta": 0.1 * jax.random.normal(k2, (c,), jnp.float32),
        "mean": 0.1 * jax.random.normal(k3, (c,), jnp.float32),
        "var": 1.0 + 0.1 * jax.random.uniform(k4, (c,), jnp.float32),
    }


def init_flow_step(key, c, mid):
    ks = jax.random.split(key, 9)
    half = c // 2
    q, _ = jnp.linalg.qr(jax.random.normal(ks[2], (c, c), jnp.float32))
    return {
        "actnorm": {
            "bias": 0.1 * jax.random.normal(ks[0], (c,), jnp.float32),
            "logs": 0.1 * jax.random.normal(ks[1], (c,), jnp.float32),
        },
        "invconv": {"weight": q, "logdet": jnp.linalg.slogdet(q)[1]},
        "coupling": {
            "scale": jnp.ones((half,), jnp.float32),
            "nn": {
                "in_norm": _bn_params(ks[3], half),
                "in_conv_w": 0.05 * jax.random.normal(ks[4], (mid, half, 3, 3), jnp.float32),
                "mid_norm": _bn_params(ks[5], mid),
                "mid_conv_w": 0.05 * jax.random.normal(ks[6], (mid, mid, 1, 1), jnp.float32),
                "out_norm": _bn_params(ks[7], mid),
                # reference zero-inits out_conv; use small values so the kernel is non-trivial
                "out_conv_w": 0.05 * jax.random.normal(ks[8], (c, mid, 3, 3), jnp.float32),
                "out_conv_b": jnp.zeros((c,), jnp.float32),
            },
        },
    }


def init_glow(key, c, mid, num_levels, num_steps):
    k_steps, k_next = jax.random.split(key)
    params = {
        "steps": [init_flow_step(jax.random.fold_in(k_steps, i), c, mid)
                  for i in range(num_steps)],
        "next": None,
    }
    if num_levels > 1:
        params["next"] = init_glow(k_next, 2 * c, mid, num_levels - 1, num_steps)
    return params


# ----------------------------------- main -------------------------------------
if __name__ == "__main__":
    B, C, H, W = 2, 4, 16, 16
    MID = 32
    NUM_LEVELS, NUM_STEPS = 2, 2
    HINT_IDX = (1,)

    root = jax.random.PRNGKey(0)
    kx, kp = jax.random.split(root)
    x = jax.random.normal(kx, (B, C, H, W), jnp.float32)
    sldj = jnp.zeros((B,), jnp.float32)
    params = init_glow(kp, C, MID, NUM_LEVELS, NUM_STEPS)

    fwd = jax.jit(lambda x_, s_: glow_forward(x_, s_, params, HINT_IDX))
    x_out, sldj_out, hints = fwd(x, sldj)
    jax.block_until_ready((x_out, sldj_out, hints))

    assert x_out.shape == (B, C, H, W)
    assert sldj_out.shape == (B,)
    assert len(hints) == NUM_LEVELS * len(HINT_IDX)
    print("KERNEL_OK")
</pallas_src>

<mosaic_0001>
module attributes {stable_mosaic.version = 11 : i64} {
  func.func @_invstep_kernel(%arg0: i32, %arg1: memref<1x4x256xf32, #tpu.memory_space<vmem>>, %arg2: memref<4x4xf32, #tpu.memory_space<vmem>>, %arg3: memref<4x1xf32, #tpu.memory_space<vmem>>, %arg4: memref<1x4x256xf32, #tpu.memory_space<vmem>>) attributes {dimension_semantics = [#tpu.dimension_semantics<parallel>], iteration_bounds = array<i64: 2>, scalar_prefetch = 0 : i64, scratch_operands = 0 : i64, tpu.core_type = #tpu.core_type<tc>, window_params = [{transform_indices = @transform_0, window_bounds = array<i64: 1, 4, 256>}, {pipeline_mode = #tpu.pipeline_mode<synchronous>, transform_indices = @transform_1, window_bounds = array<i64: 4, 4>}, {pipeline_mode = #tpu.pipeline_mode<synchronous>, transform_indices = @transform_2, window_bounds = array<i64: 4, 1>}, {transform_indices = @transform_3, window_bounds = array<i64: 1, 4, 256>}]} {
    %c0 = arith.constant 0 : index
    %c0_0 = arith.constant 0 : index
    %0 = vector.load %arg2[%c0, %c0_0] : memref<4x4xf32, #tpu.memory_space<vmem>>, vector<4x4xf32>
    %c0_1 = arith.constant 0 : index
    %c0_2 = arith.constant 0 : index
    %c0_3 = arith.constant 0 : index
    %1 = vector.load %arg1[%c0_1, %c0_2, %c0_3] : memref<1x4x256xf32, #tpu.memory_space<vmem>>, vector<1x4x256xf32>
    %2 = vector.shape_cast %1 : vector<1x4x256xf32> to vector<4x256xf32>
    %cst = arith.constant dense<0.000000e+00> : vector<4x256xf32>
    %3 = tpu.matmul %0, %2, %cst {dimension_numbers = #tpu.dot_dimension_numbers<[1], [0], [0], [1], [0, 0, 1, 1], [], []>} : vector<4x4xf32>, vector<4x256xf32>, vector<4x256xf32> -> vector<4x256xf32>
    %c0_4 = arith.constant 0 : index
    %c0_5 = arith.constant 0 : index
    %4 = vector.load %arg3[%c0_4, %c0_5] : memref<4x1xf32, #tpu.memory_space<vmem>>, vector<4x1xf32>
    %5 = vector.broadcast %4 : vector<4x1xf32> to vector<4x256xf32>
    %6 = arith.addf %3, %5 : vector<4x256xf32>
    %c0_6 = arith.constant 0 : index
    %c0_7 = arith.constant 0 : index
    %c0_8 = arith.constant 0 : index
    %7 = vector.load %arg4[%c0_6, %c0_7, %c0_8] : memref<1x4x256xf32, #tpu.memory_space<vmem>>, vector<1x4x256xf32>
    %8 = vector.shape_cast %7 : vector<1x4x256xf32> to vector<4x256xf32>
    %9 = vector.shape_cast %6 : vector<4x256xf32> to vector<1x4x256xf32>
    tpu.vector_store %arg4[%c0_6, %c0_7, %c0_8], %9 {strides = array<i32>} : memref<1x4x256xf32, #tpu.memory_space<vmem>>, vector<1x4x256xf32>,
    return
  }
  func.func @transform_0(%arg0: i32) -> (i32, i32, i32) {
    %c0_i32 = arith.constant 0 : i32
    %c0_i32_0 = arith.constant 0 : i32
    %c0_i32_1 = arith.constant 0 : i32
    return %arg0, %c0_i32, %c0_i32_0 : i32, i32, i32
  }
  func.func @transform_1(%arg0: i32) -> (i32, i32) {
    %c0_i32 = arith.constant 0 : i32
    %c0_i32_0 = arith.constant 0 : i32
    %c0_i32_1 = arith.constant 0 : i32
    return %c0_i32, %c0_i32_0 : i32, i32
  }
  func.func @transform_2(%arg0: i32) -> (i32, i32) {
    %c0_i32 = arith.constant 0 : i32
    %c0_i32_0 = arith.constant 0 : i32
    %c0_i32_1 = arith.constant 0 : i32
    return %c0_i32, %c0_i32_0 : i32, i32
  }
  func.func @transform_3(%arg0: i32) -> (i32, i32, i32) {
    %c0_i32 = arith.constant 0 : i32
    %c0_i32_0 = arith.constant 0 : i32
    %c0_i32_1 = arith.constant 0 : i32
    return %arg0, %c0_i32, %c0_i32_0 : i32, i32, i32
  }
}

module attributes {stable_mosaic.version = 11 : i64} {
  func.func @_coupling_nn1_kernel(%arg0: i32, %arg1: memref<1x18x256xf32, #tpu.memory_space<vmem>>, %arg2: memref<32x18xf32, #tpu.memory_space<vmem>>, %arg3: memref<32x32xf32, #tpu.memory_space<vmem>>, %arg4: memref<32x1xf32, #tpu.memory_space<vmem>>, %arg5: memref<32x1xf32, #tpu.memory_space<vmem>>, %arg6: memref<32x1xf32, #tpu.memory_space<vmem>>, %arg7: memref<1x32x256xf32, #tpu.memory_space<vmem>>) attributes {dimension_semantics = [#tpu.dimension_semantics<parallel>], iteration_bounds = array<i64: 2>, scalar_prefetch = 0 : i64, scratch_operands = 0 : i64, tpu.core_type = #tpu.core_type<tc>, window_params = [{transform_indices = @transform_0, window_bounds = array<i64: 1, 18, 256>}, {pipeline_mode = #tpu.pipeline_mode<synchronous>, transform_indices = @transform_1, window_bounds = array<i64: 32, 18>}, {pipeline_mode = #tpu.pipeline_mode<synchronous>, transform_indices = @transform_2, window_bounds = array<i64: 32, 32>}, {pipeline_mode = #tpu.pipeline_mode<synchronous>, transform_indices = @transform_3, window_bounds = array<i64: 32, 1>}, {pipeline_mode = #tpu.pipeline_mode<synchronous>, transform_indices = @transform_4, window_bounds = array<i64: 32, 1>}, {pipeline_mode = #tpu.pipeline_mode<synchronous>, transform_indices = @transform_5, window_bounds = array<i64: 32, 1>}, {transform_indices = @transform_6, window_bounds = array<i64: 1, 32, 256>}]} {
    %c0 = arith.constant 0 : index
    %c0_0 = arith.constant 0 : index
    %0 = vector.load %arg2[%c0, %c0_0] : memref<32x18xf32, #tpu.memory_space<vmem>>, vector<32x18xf32>
    %c0_1 = arith.constant 0 : index
    %c0_2 = arith.constant 0 : index
    %c0_3 = arith.constant 0 : index
    %1 = vector.load %arg1[%c0_1, %c0_2, %c0_3] : memref<1x18x256xf32, #tpu.memory_space<vmem>>, vector<1x18x256xf32>
    %2 = vector.shape_cast %1 : vector<1x18x256xf32> to vector<18x256xf32>
    %cst = arith.constant dense<0.000000e+00> : vector<32x256xf32>
    %3 = tpu.matmul %0, %2, %cst {dimension_numbers = #tpu.dot_dimension_numbers<[1], [0], [0], [1], [0, 0, 1, 1], [], []>} : vector<32x18xf32>, vector<18x256xf32>, vector<32x256xf32> -> vector<32x256xf32>
    %cst_4 = arith.constant 0.000000e+00 : f32
    %4 = vector.broadcast %cst_4 : f32 to vector<32x256xf32>
    %5 = arith.maximumf %3, %4 : vector<32x256xf32>
    %c0_5 = arith.constant 0 : index
    %c0_6 = arith.constant 0 : index
    %6 = vector.load %arg3[%c0_5, %c0_6] : memref<32x32xf32, #tpu.memory_space<vmem>>, vector<32x32xf32>
    %cst_7 = arith.constant dense<0.000000e+00> : vector<32x256xf32>
    %7 = tpu.matmul %6, %5, %cst_7 {dimension_numbers = #tpu.dot_dimension_numbers<[1], [0], [0], [1], [0, 0, 1, 1], [], []>} : vector<32x32xf32>, vector<32x256xf32>, vector<32x256xf32> -> vector<32x256xf32>
    %c0_8 = arith.constant 0 : index
    %c0_9 = arith.constant 0 : index
    %8 = vector.load %arg4[%c0_8, %c0_9] : memref<32x1xf32, #tpu.memory_space<vmem>>, vector<32x1xf32>
    %9 = vector.broadcast %8 : vector<32x1xf32> to vector<32x256xf32>
    %10 = arith.addf %7, %9 : vector<32x256xf32>
    %cst_10 = arith.constant 0.000000e+00 : f32
    %11 = vector.broadcast %cst_10 : f32 to vector<32x256xf32>
    %12 = arith.maximumf %10, %11 : vector<32x256xf32>
    %c0_11 = arith.constant 0 : index
    %c0_12 = arith.constant 0 : index
    %13 = vector.load %arg5[%c0_11, %c0_12] : memref<32x1xf32, #tpu.memory_space<vmem>>, vector<32x1xf32>
    %14 = vector.broadcast %13 : vector<32x1xf32> to vector<32x256xf32>
    %15 = arith.mulf %12, %14 : vector<32x256xf32>
    %c0_13 = arith.constant 0 : index
    %c0_14 = arith.constant 0 : index
    %16 = vector.load %arg6[%c0_13, %c0_14] : memref<32x1xf32, #tpu.memory_space<vmem>>, vector<32x1xf32>
    %17 = vector.broadcast %16 : vector<32x1xf32> to vector<32x256xf32>
    %18 = arith.addf %15, %17 : vector<32x256xf32>
    %c0_15 = arith.constant 0 : index
    %c0_16 = arith.constant 0 : index
    %c0_17 = arith.constant 0 : index
    %19 = vector.load %arg7[%c0_15, %c0_16, %c0_17] : memref<1x32x256xf32, #tpu.memory_space<vmem>>, vector<1x32x256xf32>
    %20 = vector.shape_cast %19 : vector<1x32x256xf32> to vector<32x256xf32>
    %21 = vector.shape_cast %18 : vector<32x256xf32> to vector<1x32x256xf32>
    tpu.vector_store %arg7[%c0_15, %c0_16, %c0_17], %21 {strides = array<i32>} : memref<1x32x256xf32, #tpu.memory_space<vmem>>, vector<1x32x256xf32>,
    return
  }
  func.func @transform_0(%arg0: i32) -> (i32, i32, i32) {
    %c0_i32 = arith.constant 0 : i32
    %c0_i32_0 = arith.constant 0 : i32
    %c0_i32_1 = arith.constant 0 : i32
    return %arg0, %c0_i32, %c0_i32_0 : i32, i32, i32
  }
  func.func @transform_1(%arg0: i32) -> (i32, i32) {
    %c0_i32 = arith.constant 0 : i32
    %c0_i32_0 = arith.constant 0 : i32
    %c0_i32_1 = arith.constant 0 : i32
    return %c0_i32, %c0_i32_0 : i32, i32
  }
  func.func @transform_2(%arg0: i32) -> (i32, i32) {
    %c0_i32 = arith.constant 0 : i32
    %c0_i32_0 = arith.constant 0 : i32
    %c0_i32_1 = arith.constant 0 : i32
    return %c0_i32, %c0_i32_0 : i32, i32
  }
  func.func @transform_3(%arg0: i32) -> (i32, i32) {
    %c0_i32 = arith.constant 0 : i32
    %c0_i32_0 = arith.constant 0 : i32
    %c0_i32_1 = arith.constant 0 : i32
    return %c0_i32, %c0_i32_0 : i32, i32
  }
  func.func @transform_4(%arg0: i32) -> (i32, i32) {
    %c0_i32 = arith.constant 0 : i32
    %c0_i32_0 = arith.constant 0 : i32
    %c0_i32_1 = arith.constant 0 : i32
    return %c0_i32, %c0_i32_0 : i32, i32
  }
  func.func @transform_5(%arg0: i32) -> (i32, i32) {
    %c0_i32 = arith.constant 0 : i32
    %c0_i32_0 = arith.constant 0 : i32
    %c0_i32_1 = arith.constant 0 : i32
    return %c0_i32, %c0_i32_0 : i32, i32
  }
  func.func @transform_6(%arg0: i32) -> (i32, i32, i32) {
    %c0_i32 = arith.constant 0 : i32
    %c0_i32_0 = arith.constant 0 : i32
    %c0_i32_1 = arith.constant 0 : i32
    return %arg0, %c0_i32, %c0_i32_0 : i32, i32, i32
  }
}

module attributes {stable_mosaic.version = 11 : i64} {
  func.func @_coupling_out_kernel(%arg0: i32, %arg1: memref<1x288x256xf32, #tpu.memory_space<vmem>>, %arg2: memref<1x2x256xf32, #tpu.memory_space<vmem>>, %arg3: memref<2x288xf32, #tpu.memory_space<vmem>>, %arg4: memref<2x288xf32, #tpu.memory_space<vmem>>, %arg5: memref<2x1xf32, #tpu.memory_space<vmem>>, %arg6: memref<2x1xf32, #tpu.memory_space<vmem>>, %arg7: memref<2x1xf32, #tpu.memory_space<vmem>>, %arg8: memref<1x2x256xf32, #tpu.memory_space<vmem>>, %arg9: memref<1x1x1xf32, #tpu.memory_space<vmem>>) attributes {dimension_semantics = [#tpu.dimension_semantics<parallel>], iteration_bounds = array<i64: 2>, scalar_prefetch = 0 : i64, scratch_operands = 0 : i64, tpu.core_type = #tpu.core_type<tc>, window_params = [{transform_indices = @transform_0, window_bounds = array<i64: 1, 288, 256>}, {transform_indices = @transform_1, window_bounds = array<i64: 1, 2, 256>}, {pipeline_mode = #tpu.pipeline_mode<synchronous>, transform_indices = @transform_2, window_bounds = array<i64: 2, 288>}, {pipeline_mode = #tpu.pipeline_mode<synchronous>, transform_indices = @transform_3, window_bounds = array<i64: 2, 288>}, {pipeline_mode = #tpu.pipeline_mode<synchronous>, transform_indices = @transform_4, window_bounds = array<i64: 2, 1>}, {pipeline_mode = #tpu.pipeline_mode<synchronous>, transform_indices = @transform_5, window_bounds = array<i64: 2, 1>}, {pipeline_mode = #tpu.pipeline_mode<synchronous>, transform_indices = @transform_6, window_bounds = array<i64: 2, 1>}, {transform_indices = @transform_7, window_bounds = array<i64: 1, 2, 256>}, {transform_indices = @transform_8, window_bounds = array<i64: 1, 1, 1>}]} {
    %c0 = arith.constant 0 : index
    %c0_0 = arith.constant 0 : index
    %0 = vector.load %arg3[%c0, %c0_0] : memref<2x288xf32, #tpu.memory_space<vmem>>, vector<2x288xf32>
    %c0_1 = arith.constant 0 : index
    %c0_2 = arith.constant 0 : index
    %c0_3 = arith.constant 0 : index
    %1 = vector.load %arg1[%c0_1, %c0_2, %c0_3] : memref<1x288x256xf32, #tpu.memory_space<vmem>>, vector<1x288x256xf32>
    %2 = vector.shape_cast %1 : vector<1x288x256xf32> to vector<288x256xf32>
    %cst = arith.constant dense<0.000000e+00> : vector<2x256xf32>
    %3 = tpu.matmul %0, %2, %cst {dimension_numbers = #tpu.dot_dimension_numbers<[1], [0], [0], [1], [0, 0, 1, 1], [], []>} : vector<2x288xf32>, vector<288x256xf32>, vector<2x256xf32> -> vector<2x256xf32>
    %c0_4 = arith.constant 0 : index
    %c0_5 = arith.constant 0 : index
    %4 = vector.load %arg5[%c0_4, %c0_5] : memref<2x1xf32, #tpu.memory_space<vmem>>, vector<2x1xf32>
    %5 = vector.broadcast %4 : vector<2x1xf32> to vector<2x256xf32>
    %6 = arith.addf %3, %5 : vector<2x256xf32>
    %c0_6 = arith.constant 0 : index
    %c0_7 = arith.constant 0 : index
    %7 = vector.load %arg4[%c0_6, %c0_7] : memref<2x288xf32, #tpu.memory_space<vmem>>, vector<2x288xf32>
    %c0_8 = arith.constant 0 : index
    %c0_9 = arith.constant 0 : index
    %c0_10 = arith.constant 0 : index
    %8 = vector.load %arg1[%c0_8, %c0_9, %c0_10] : memref<1x288x256xf32, #tpu.memory_space<vmem>>, vector<1x288x256xf32>
    %9 = vector.shape_cast %8 : vector<1x288x256xf32> to vector<288x256xf32>
    %cst_11 = arith.constant dense<0.000000e+00> : vector<2x256xf32>
    %10 = tpu.matmul %7, %9, %cst_11 {dimension_numbers = #tpu.dot_dimension_numbers<[1], [0], [0], [1], [0, 0, 1, 1], [], []>} : vector<2x288xf32>, vector<288x256xf32>, vector<2x256xf32> -> vector<2x256xf32>
    %c0_12 = arith.constant 0 : index
    %c0_13 = arith.constant 0 : index
    %11 = vector.load %arg6[%c0_12, %c0_13] : memref<2x1xf32, #tpu.memory_space<vmem>>, vector<2x1xf32>
    %12 = vector.broadcast %11 : vector<2x1xf32> to vector<2x256xf32>
    %13 = arith.addf %10, %12 : vector<2x256xf32>
    %c0_14 = arith.constant 0 : index
    %c0_15 = arith.constant 0 : index
    %14 = vector.load %arg7[%c0_14, %c0_15] : memref<2x1xf32, #tpu.memory_space<vmem>>, vector<2x1xf32>
    %15 = math.tanh %6 : vector<2x256xf32>
    %16 = vector.broadcast %14 : vector<2x1xf32> to vector<2x256xf32>
    %17 = arith.mulf %16, %15 : vector<2x256xf32>
    %c0_16 = arith.constant 0 : index
    %c0_17 = arith.constant 0 : index
    %c0_18 = arith.constant 0 : index
    %18 = vector.load %arg2[%c0_16, %c0_17, %c0_18] : memref<1x2x256xf32, #tpu.memory_space<vmem>>, vector<1x2x256xf32>
    %19 = vector.shape_cast %18 : vector<1x2x256xf32> to vector<2x256xf32>
    %20 = arith.addf %19, %13 : vector<2x256xf32>
    %21 = math.exp %17 : vector<2x256xf32>
    %22 = arith.mulf %20, %21 : vector<2x256xf32>
    %c0_19 = arith.constant 0 : index
    %c0_20 = arith.constant 0 : index
    %c0_21 = arith.constant 0 : index
    %23 = vector.load %arg8[%c0_19, %c0_20, %c0_21] : memref<1x2x256xf32, #tpu.memory_space<vmem>>, vector<1x2x256xf32>
    %24 = vector.shape_cast %23 : vector<1x2x256xf32> to vector<2x256xf32>
    %25 = vector.shape_cast %22 : vector<2x256xf32> to vector<1x2x256xf32>
    tpu.vector_store %arg8[%c0_19, %c0_20, %c0_21], %25 {strides = array<i32>} : memref<1x2x256xf32, #tpu.memory_space<vmem>>, vector<1x2x256xf32>,
    %cst_22 = arith.constant dense<0.000000e+00> : vector<2xf32>
    %26 = vector.multi_reduction <add>, %17, %cst_22 [1] : vector<2x256xf32> to vector<2xf32>
    %27 = vector.shape_cast %26 : vector<2xf32> to vector<2x1xf32>
    %cst_23 = arith.constant dense<0.000000e+00> : vector<1xf32>
    %28 = vector.multi_reduction <add>, %27, %cst_23 [0] : vector<2x1xf32> to vector<1xf32>
    %29 = vector.shape_cast %28 : vector<1xf32> to vector<1x1xf32>
    %c0_24 = arith.constant 0 : index
    %c0_25 = arith.constant 0 : index
    %c0_26 = arith.constant 0 : index
    %30 = vector.load %arg9[%c0_24, %c0_25, %c0_26] : memref<1x1x1xf32, #tpu.memory_space<vmem>>, vector<1x1x1xf32>
    %31 = vector.shape_cast %30 : vector<1x1x1xf32> to vector<1x1xf32>
    %32 = vector.shape_cast %29 : vector<1x1xf32> to vector<1x1x1xf32>
    tpu.vector_store %arg9[%c0_24, %c0_25, %c0_26], %32 {strides = array<i32>} : memref<1x1x1xf32, #tpu.memory_space<vmem>>, vector<1x1x1xf32>,
    return
  }
  func.func @transform_0(%arg0: i32) -> (i32, i32, i32) {
    %c0_i32 = arith.constant 0 : i32
    %c0_i32_0 = arith.constant 0 : i32
    %c0_i32_1 = arith.constant 0 : i32
    return %arg0, %c0_i32, %c0_i32_0 : i32, i32, i32
  }
  func.func @transform_1(%arg0: i32) -> (i32, i32, i32) {
    %c0_i32 = arith.constant 0 : i32
    %c0_i32_0 = arith.constant 0 : i32
    %c0_i32_1 = arith.constant 0 : i32
    return %arg0, %c0_i32, %c0_i32_0 : i32, i32, i32
  }
  func.func @transform_2(%arg0: i32) -> (i32, i32) {
    %c0_i32 = arith.constant 0 : i32
    %c0_i32_0 = arith.constant 0 : i32
    %c0_i32_1 = arith.constant 0 : i32
    return %c0_i32, %c0_i32_0 : i32, i32
  }
  func.func @transform_3(%arg0: i32) -> (i32, i32) {
    %c0_i32 = arith.constant 0 : i32
    %c0_i32_0 = arith.constant 0 : i32
    %c0_i32_1 = arith.constant 0 : i32
    return %c0_i32, %c0_i32_0 : i32, i32
  }
  func.func @transform_4(%arg0: i32) -> (i32, i32) {
    %c0_i32 = arith.constant 0 : i32
    %c0_i32_0 = arith.constant 0 : i32
    %c0_i32_1 = arith.constant 0 : i32
    return %c0_i32, %c0_i32_0 : i32, i32
  }
  func.func @transform_5(%arg0: i32) -> (i32, i32) {
    %c0_i32 = arith.constant 0 : i32
    %c0_i32_0 = arith.constant 0 : i32
    %c0_i32_1 = arith.constant 0 : i32
    return %c0_i32, %c0_i32_0 : i32, i32
  }
  func.func @transform_6(%arg0: i32) -> (i32, i32) {
    %c0_i32 = arith.constant 0 : i32
    %c0_i32_0 = arith.constant 0 : i32
    %c0_i32_1 = arith.constant 0 : i32
    return %c0_i32, %c0_i32_0 : i32, i32
  }
  func.func @transform_7(%arg0: i32) -> (i32, i32, i32) {
    %c0_i32 = arith.constant 0 : i32
    %c0_i32_0 = arith.constant 0 : i32
    %c0_i32_1 = arith.constant 0 : i32
    return %arg0, %c0_i32, %c0_i32_0 : i32, i32, i32
  }
  func.func @transform_8(%arg0: i32) -> (i32, i32, i32) {
    %c0_i32 = arith.constant 0 : i32
    %c0_i32_0 = arith.constant 0 : i32
    %c0_i32_1 = arith.constant 0 : i32
    return %arg0, %c0_i32, %c0_i32_0 : i32, i32, i32
  }
}

module attributes {stable_mosaic.version = 11 : i64} {
  func.func @_invstep_kernel(%arg0: i32, %arg1: memref<1x8x64xf32, #tpu.memory_space<vmem>>, %arg2: memref<8x8xf32, #tpu.memory_space<vmem>>, %arg3: memref<8x1xf32, #tpu.memory_space<vmem>>, %arg4: memref<1x8x64xf32, #tpu.memory_space<vmem>>) attributes {dimension_semantics = [#tpu.dimension_semantics<parallel>], iteration_bounds = array<i64: 2>, scalar_prefetch = 0 : i64, scratch_operands = 0 : i64, tpu.core_type = #tpu.core_type<tc>, window_params = [{transform_indices = @transform_0, window_bounds = array<i64: 1, 8, 64>}, {pipeline_mode = #tpu.pipeline_mode<synchronous>, transform_indices = @transform_1, window_bounds = array<i64: 8, 8>}, {pipeline_mode = #tpu.pipeline_mode<synchronous>, transform_indices = @transform_2, window_bounds = array<i64: 8, 1>}, {transform_indices = @transform_3, window_bounds = array<i64: 1, 8, 64>}]} {
    %c0 = arith.constant 0 : index
    %c0_0 = arith.constant 0 : index
    %0 = vector.load %arg2[%c0, %c0_0] : memref<8x8xf32, #tpu.memory_space<vmem>>, vector<8x8xf32>
    %c0_1 = arith.constant 0 : index
    %c0_2 = arith.constant 0 : index
    %c0_3 = arith.constant 0 : index
    %1 = vector.load %arg1[%c0_1, %c0_2, %c0_3] : memref<1x8x64xf32, #tpu.memory_space<vmem>>, vector<1x8x64xf32>
    %2 = vector.shape_cast %1 : vector<1x8x64xf32> to vector<8x64xf32>
    %cst = arith.constant dense<0.000000e+00> : vector<8x64xf32>
    %3 = tpu.matmul %0, %2, %cst {dimension_numbers = #tpu.dot_dimension_numbers<[1], [0], [0], [1], [0, 0, 1, 1], [], []>} : vector<8x8xf32>, vector<8x64xf32>, vector<8x64xf32> -> vector<8x64xf32>
    %c0_4 = arith.constant 0 : index
    %c0_5 = arith.constant 0 : index
    %4 = vector.load %arg3[%c0_4, %c0_5] : memref<8x1xf32, #tpu.memory_space<vmem>>, vector<8x1xf32>
    %5 = vector.broadcast %4 : vector<8x1xf32> to vector<8x64xf32>
    %6 = arith.addf %3, %5 : vector<8x64xf32>
    %c0_6 = arith.constant 0 : index
    %c0_7 = arith.constant 0 : index
    %c0_8 = arith.constant 0 : index
    %7 = vector.load %arg4[%c0_6, %c0_7, %c0_8] : memref<1x8x64xf32, #tpu.memory_space<vmem>>, vector<1x8x64xf32>
    %8 = vector.shape_cast %7 : vector<1x8x64xf32> to vector<8x64xf32>
    %9 = vector.shape_cast %6 : vector<8x64xf32> to vector<1x8x64xf32>
    tpu.vector_store %arg4[%c0_6, %c0_7, %c0_8], %9 {strides = array<i32>} : memref<1x8x64xf32, #tpu.memory_space<vmem>>, vector<1x8x64xf32>,
    return
  }
  func.func @transform_0(%arg0: i32) -> (i32, i32, i32) {
    %c0_i32 = arith.constant 0 : i32
    %c0_i32_0 = arith.constant 0 : i32
    %c0_i32_1 = arith.constant 0 : i32
    return %arg0, %c0_i32, %c0_i32_0 : i32, i32, i32
  }
  func.func @transform_1(%arg0: i32) -> (i32, i32) {
    %c0_i32 = arith.constant 0 : i32
    %c0_i32_0 = arith.constant 0 : i32
    %c0_i32_1 = arith.constant 0 : i32
    return %c0_i32, %c0_i32_0 : i32, i32
  }
  func.func @transform_2(%arg0: i32) -> (i32, i32) {
    %c0_i32 = arith.constant 0 : i32
    %c0_i32_0 = arith.constant 0 : i32
    %c0_i32_1 = arith.constant 0 : i32
    return %c0_i32, %c0_i32_0 : i32, i32
  }
  func.func @transform_3(%arg0: i32) -> (i32, i32, i32) {
    %c0_i32 = arith.constant 0 : i32
    %c0_i32_0 = arith.constant 0 : i32
    %c0_i32_1 = arith.constant 0 : i32
    return %arg0, %c0_i32, %c0_i32_0 : i32, i32, i32
  }
}

module attributes {stable_mosaic.version = 11 : i64} {
  func.func @_coupling_nn1_kernel(%arg0: i32, %arg1: memref<1x36x64xf32, #tpu.memory_space<vmem>>, %arg2: memref<32x36xf32, #tpu.memory_space<vmem>>, %arg3: memref<32x32xf32, #tpu.memory_space<vmem>>, %arg4: memref<32x1xf32, #tpu.memory_space<vmem>>, %arg5: memref<32x1xf32, #tpu.memory_space<vmem>>, %arg6: memref<32x1xf32, #tpu.memory_space<vmem>>, %arg7: memref<1x32x64xf32, #tpu.memory_space<vmem>>) attributes {dimension_semantics = [#tpu.dimension_semantics<parallel>], iteration_bounds = array<i64: 2>, scalar_prefetch = 0 : i64, scratch_operands = 0 : i64, tpu.core_type = #tpu.core_type<tc>, window_params = [{transform_indices = @transform_0, window_bounds = array<i64: 1, 36, 64>}, {pipeline_mode = #tpu.pipeline_mode<synchronous>, transform_indices = @transform_1, window_bounds = array<i64: 32, 36>}, {pipeline_mode = #tpu.pipeline_mode<synchronous>, transform_indices = @transform_2, window_bounds = array<i64: 32, 32>}, {pipeline_mode = #tpu.pipeline_mode<synchronous>, transform_indices = @transform_3, window_bounds = array<i64: 32, 1>}, {pipeline_mode = #tpu.pipeline_mode<synchronous>, transform_indices = @transform_4, window_bounds = array<i64: 32, 1>}, {pipeline_mode = #tpu.pipeline_mode<synchronous>, transform_indices = @transform_5, window_bounds = array<i64: 32, 1>}, {transform_indices = @transform_6, window_bounds = array<i64: 1, 32, 64>}]} {
    %c0 = arith.constant 0 : index
    %c0_0 = arith.constant 0 : index
    %0 = vector.load %arg2[%c0, %c0_0] : memref<32x36xf32, #tpu.memory_space<vmem>>, vector<32x36xf32>
    %c0_1 = arith.constant 0 : index
    %c0_2 = arith.constant 0 : index
    %c0_3 = arith.constant 0 : index
    %1 = vector.load %arg1[%c0_1, %c0_2, %c0_3] : memref<1x36x64xf32, #tpu.memory_space<vmem>>, vector<1x36x64xf32>
    %2 = vector.shape_cast %1 : vector<1x36x64xf32> to vector<36x64xf32>
    %cst = arith.constant dense<0.000000e+00> : vector<32x64xf32>
    %3 = tpu.matmul %0, %2, %cst {dimension_numbers = #tpu.dot_dimension_numbers<[1], [0], [0], [1], [0, 0, 1, 1], [], []>} : vector<32x36xf32>, vector<36x64xf32>, vector<32x64xf32> -> vector<32x64xf32>
    %cst_4 = arith.constant 0.000000e+00 : f32
    %4 = vector.broadcast %cst_4 : f32 to vector<32x64xf32>
    %5 = arith.maximumf %3, %4 : vector<32x64xf32>
    %c0_5 = arith.constant 0 : index
    %c0_6 = arith.constant 0 : index
    %6 = vector.load %arg3[%c0_5, %c0_6] : memref<32x32xf32, #tpu.memory_space<vmem>>, vector<32x32xf32>
    %cst_7 = arith.constant dense<0.000000e+00> : vector<32x64xf32>
    %7 = tpu.matmul %6, %5, %cst_7 {dimension_numbers = #tpu.dot_dimension_numbers<[1], [0], [0], [1], [0, 0, 1, 1], [], []>} : vector<32x32xf32>, vector<32x64xf32>, vector<32x64xf32> -> vector<32x64xf32>
    %c0_8 = arith.constant 0 : index
    %c0_9 = arith.constant 0 : index
    %8 = vector.load %arg4[%c0_8, %c0_9] : memref<32x1xf32, #tpu.memory_space<vmem>>, vector<32x1xf32>
    %9 = vector.broadcast %8 : vector<32x1xf32> to vector<32x64xf32>
    %10 = arith.addf %7, %9 : vector<32x64xf32>
    %cst_10 = arith.constant 0.000000e+00 : f32
    %11 = vector.broadcast %cst_10 : f32 to vector<32x64xf32>
    %12 = arith.maximumf %10, %11 : vector<32x64xf32>
    %c0_11 = arith.constant 0 : index
    %c0_12 = arith.constant 0 : index
    %13 = vector.load %arg5[%c0_11, %c0_12] : memref<32x1xf32, #tpu.memory_space<vmem>>, vector<32x1xf32>
    %14 = vector.broadcast %13 : vector<32x1xf32> to vector<32x64xf32>
    %15 = arith.mulf %12, %14 : vector<32x64xf32>
    %c0_13 = arith.constant 0 : index
    %c0_14 = arith.constant 0 : index
    %16 = vector.load %arg6[%c0_13, %c0_14] : memref<32x1xf32, #tpu.memory_space<vmem>>, vector<32x1xf32>
    %17 = vector.broadcast %16 : vector<32x1xf32> to vector<32x64xf32>
    %18 = arith.addf %15, %17 : vector<32x64xf32>
    %c0_15 = arith.constant 0 : index
    %c0_16 = arith.constant 0 : index
    %c0_17 = arith.constant 0 : index
    %19 = vector.load %arg7[%c0_15, %c0_16, %c0_17] : memref<1x32x64xf32, #tpu.memory_space<vmem>>, vector<1x32x64xf32>
    %20 = vector.shape_cast %19 : vector<1x32x64xf32> to vector<32x64xf32>
    %21 = vector.shape_cast %18 : vector<32x64xf32> to vector<1x32x64xf32>
    tpu.vector_store %arg7[%c0_15, %c0_16, %c0_17], %21 {strides = array<i32>} : memref<1x32x64xf32, #tpu.memory_space<vmem>>, vector<1x32x64xf32>,
    return
  }
  func.func @transform_0(%arg0: i32) -> (i32, i32, i32) {
    %c0_i32 = arith.constant 0 : i32
    %c0_i32_0 = arith.constant 0 : i32
    %c0_i32_1 = arith.constant 0 : i32
    return %arg0, %c0_i32, %c0_i32_0 : i32, i32, i32
  }
  func.func @transform_1(%arg0: i32) -> (i32, i32) {
    %c0_i32 = arith.constant 0 : i32
    %c0_i32_0 = arith.constant 0 : i32
    %c0_i32_1 = arith.constant 0 : i32
    return %c0_i32, %c0_i32_0 : i32, i32
  }
  func.func @transform_2(%arg0: i32) -> (i32, i32) {
    %c0_i32 = arith.constant 0 : i32
    %c0_i32_0 = arith.constant 0 : i32
    %c0_i32_1 = arith.constant 0 : i32
    return %c0_i32, %c0_i32_0 : i32, i32
  }
  func.func @transform_3(%arg0: i32) -> (i32, i32) {
    %c0_i32 = arith.constant 0 : i32
    %c0_i32_0 = arith.constant 0 : i32
    %c0_i32_1 = arith.constant 0 : i32
    return %c0_i32, %c0_i32_0 : i32, i32
  }
  func.func @transform_4(%arg0: i32) -> (i32, i32) {
    %c0_i32 = arith.constant 0 : i32
    %c0_i32_0 = arith.constant 0 : i32
    %c0_i32_1 = arith.constant 0 : i32
    return %c0_i32, %c0_i32_0 : i32, i32
  }
  func.func @transform_5(%arg0: i32) -> (i32, i32) {
    %c0_i32 = arith.constant 0 : i32
    %c0_i32_0 = arith.constant 0 : i32
    %c0_i32_1 = arith.constant 0 : i32
    return %c0_i32, %c0_i32_0 : i32, i32
  }
  func.func @transform_6(%arg0: i32) -> (i32, i32, i32) {
    %c0_i32 = arith.constant 0 : i32
    %c0_i32_0 = arith.constant 0 : i32
    %c0_i32_1 = arith.constant 0 : i32
    return %arg0, %c0_i32, %c0_i32_0 : i32, i32, i32
  }
}

module attributes {stable_mosaic.version = 11 : i64} {
  func.func @_coupling_out_kernel(%arg0: i32, %arg1: memref<1x288x64xf32, #tpu.memory_space<vmem>>, %arg2: memref<1x4x64xf32, #tpu.memory_space<vmem>>, %arg3: memref<4x288xf32, #tpu.memory_space<vmem>>, %arg4: memref<4x288xf32, #tpu.memory_space<vmem>>, %arg5: memref<4x1xf32, #tpu.memory_space<vmem>>, %arg6: memref<4x1xf32, #tpu.memory_space<vmem>>, %arg7: memref<4x1xf32, #tpu.memory_space<vmem>>, %arg8: memref<1x4x64xf32, #tpu.memory_space<vmem>>, %arg9: memref<1x1x1xf32, #tpu.memory_space<vmem>>) attributes {dimension_semantics = [#tpu.dimension_semantics<parallel>], iteration_bounds = array<i64: 2>, scalar_prefetch = 0 : i64, scratch_operands = 0 : i64, tpu.core_type = #tpu.core_type<tc>, window_params = [{transform_indices = @transform_0, window_bounds = array<i64: 1, 288, 64>}, {transform_indices = @transform_1, window_bounds = array<i64: 1, 4, 64>}, {pipeline_mode = #tpu.pipeline_mode<synchronous>, transform_indices = @transform_2, window_bounds = array<i64: 4, 288>}, {pipeline_mode = #tpu.pipeline_mode<synchronous>, transform_indices = @transform_3, window_bounds = array<i64: 4, 288>}, {pipeline_mode = #tpu.pipeline_mode<synchronous>, transform_indices = @transform_4, window_bounds = array<i64: 4, 1>}, {pipeline_mode = #tpu.pipeline_mode<synchronous>, transform_indices = @transform_5, window_bounds = array<i64: 4, 1>}, {pipeline_mode = #tpu.pipeline_mode<synchronous>, transform_indices = @transform_6, window_bounds = array<i64: 4, 1>}, {transform_indices = @transform_7, window_bounds = array<i64: 1, 4, 64>}, {transform_indices = @transform_8, window_bounds = array<i64: 1, 1, 1>}]} {
    %c0 = arith.constant 0 : index
    %c0_0 = arith.constant 0 : index
    %0 = vector.load %arg3[%c0, %c0_0] : memref<4x288xf32, #tpu.memory_space<vmem>>, vector<4x288xf32>
    %c0_1 = arith.constant 0 : index
    %c0_2 = arith.constant 0 : index
    %c0_3 = arith.constant 0 : index
    %1 = vector.load %arg1[%c0_1, %c0_2, %c0_3] : memref<1x288x64xf32, #tpu.memory_space<vmem>>, vector<1x288x64xf32>
    %2 = vector.shape_cast %1 : vector<1x288x64xf32> to vector<288x64xf32>
    %cst = arith.constant dense<0.000000e+00> : vector<4x64xf32>
    %3 = tpu.matmul %0, %2, %cst {dimension_numbers = #tpu.dot_dimension_numbers<[1], [0], [0], [1], [0, 0, 1, 1], [], []>} : vector<4x288xf32>, vector<288x64xf32>, vector<4x64xf32> -> vector<4x64xf32>
    %c0_4 = arith.constant 0 : index
    %c0_5 = arith.constant 0 : index
    %4 = vector.load %arg5[%c0_4, %c0_5] : memref<4x1xf32, #tpu.memory_space<vmem>>, vector<4x1xf32>
    %5 = vector.broadcast %4 : vector<4x1xf32> to vector<4x64xf32>
    %6 = arith.addf %3, %5 : vector<4x64xf32>
    %c0_6 = arith.constant 0 : index
    %c0_7 = arith.constant 0 : index
    %7 = vector.load %arg4[%c0_6, %c0_7] : memref<4x288xf32, #tpu.memory_space<vmem>>, vector<4x288xf32>
    %c0_8 = arith.constant 0 : index
    %c0_9 = arith.constant 0 : index
    %c0_10 = arith.constant 0 : index
    %8 = vector.load %arg1[%c0_8, %c0_9, %c0_10] : memref<1x288x64xf32, #tpu.memory_space<vmem>>, vector<1x288x64xf32>
    %9 = vector.shape_cast %8 : vector<1x288x64xf32> to vector<288x64xf32>
    %cst_11 = arith.constant dense<0.000000e+00> : vector<4x64xf32>
    %10 = tpu.matmul %7, %9, %cst_11 {dimension_numbers = #tpu.dot_dimension_numbers<[1], [0], [0], [1], [0, 0, 1, 1], [], []>} : vector<4x288xf32>, vector<288x64xf32>, vector<4x64xf32> -> vector<4x64xf32>
    %c0_12 = arith.constant 0 : index
    %c0_13 = arith.constant 0 : index
    %11 = vector.load %arg6[%c0_12, %c0_13] : memref<4x1xf32, #tpu.memory_space<vmem>>, vector<4x1xf32>
    %12 = vector.broadcast %11 : vector<4x1xf32> to vector<4x64xf32>
    %13 = arith.addf %10, %12 : vector<4x64xf32>
    %c0_14 = arith.constant 0 : index
    %c0_15 = arith.constant 0 : index
    %14 = vector.load %arg7[%c0_14, %c0_15] : memref<4x1xf32, #tpu.memory_space<vmem>>, vector<4x1xf32>
    %15 = math.tanh %6 : vector<4x64xf32>
    %16 = vector.broadcast %14 : vector<4x1xf32> to vector<4x64xf32>
    %17 = arith.mulf %16, %15 : vector<4x64xf32>
    %c0_16 = arith.constant 0 : index
    %c0_17 = arith.constant 0 : index
    %c0_18 = arith.constant 0 : index
    %18 = vector.load %arg2[%c0_16, %c0_17, %c0_18] : memref<1x4x64xf32, #tpu.memory_space<vmem>>, vector<1x4x64xf32>
    %19 = vector.shape_cast %18 : vector<1x4x64xf32> to vector<4x64xf32>
    %20 = arith.addf %19, %13 : vector<4x64xf32>
    %21 = math.exp %17 : vector<4x64xf32>
    %22 = arith.mulf %20, %21 : vector<4x64xf32>
    %c0_19 = arith.constant 0 : index
    %c0_20 = arith.constant 0 : index
    %c0_21 = arith.constant 0 : index
    %23 = vector.load %arg8[%c0_19, %c0_20, %c0_21] : memref<1x4x64xf32, #tpu.memory_space<vmem>>, vector<1x4x64xf32>
    %24 = vector.shape_cast %23 : vector<1x4x64xf32> to vector<4x64xf32>
    %25 = vector.shape_cast %22 : vector<4x64xf32> to vector<1x4x64xf32>
    tpu.vector_store %arg8[%c0_19, %c0_20, %c0_21], %25 {strides = array<i32>} : memref<1x4x64xf32, #tpu.memory_space<vmem>>, vector<1x4x64xf32>,
    %cst_22 = arith.constant dense<0.000000e+00> : vector<4xf32>
    %26 = vector.multi_reduction <add>, %17, %cst_22 [1] : vector<4x64xf32> to vector<4xf32>
    %27 = vector.shape_cast %26 : vector<4xf32> to vector<4x1xf32>
    %cst_23 = arith.constant dense<0.000000e+00> : vector<1xf32>
    %28 = vector.multi_reduction <add>, %27, %cst_23 [0] : vector<4x1xf32> to vector<1xf32>
    %29 = vector.shape_cast %28 : vector<1xf32> to vector<1x1xf32>
    %c0_24 = arith.constant 0 : index
    %c0_25 = arith.constant 0 : index
    %c0_26 = arith.constant 0 : index
    %30 = vector.load %arg9[%c0_24, %c0_25, %c0_26] : memref<1x1x1xf32, #tpu.memory_space<vmem>>, vector<1x1x1xf32>
    %31 = vector.shape_cast %30 : vector<1x1x1xf32> to vector<1x1xf32>
    %32 = vector.shape_cast %29 : vector<1x1xf32> to vector<1x1x1xf32>
    tpu.vector_store %arg9[%c0_24, %c0_25, %c0_26], %32 {strides = array<i32>} : memref<1x1x1xf32, #tpu.memory_space<vmem>>, vector<1x1x1xf32>,
    return
  }
  func.func @transform_0(%arg0: i32) -> (i32, i32, i32) {
    %c0_i32 = arith.constant 0 : i32
    %c0_i32_0 = arith.constant 0 : i32
    %c0_i32_1 = arith.constant 0 : i32
    return %arg0, %c0_i32, %c0_i32_0 : i32, i32, i32
  }
  func.func @transform_1(%arg0: i32) -> (i32, i32, i32) {
    %c0_i32 = arith.constant 0 : i32
    %c0_i32_0 = arith.constant 0 : i32
    %c0_i32_1 = arith.constant 0 : i32
    return %arg0, %c0_i32, %c0_i32_0 : i32, i32, i32
  }
  func.func @transform_2(%arg0: i32) -> (i32, i32) {
    %c0_i32 = arith.constant 0 : i32
    %c0_i32_0 = arith.constant 0 : i32
    %c0_i32_1 = arith.constant 0 : i32
    return %c0_i32, %c0_i32_0 : i32, i32
  }
  func.func @transform_3(%arg0: i32) -> (i32, i32) {
    %c0_i32 = arith.constant 0 : i32
    %c0_i32_0 = arith.constant 0 : i32
    %c0_i32_1 = arith.constant 0 : i32
    return %c0_i32, %c0_i32_0 : i32, i32
  }
  func.func @transform_4(%arg0: i32) -> (i32, i32) {
    %c0_i32 = arith.constant 0 : i32
    %c0_i32_0 = arith.constant 0 : i32
    %c0_i32_1 = arith.constant 0 : i32
    return %c0_i32, %c0_i32_0 : i32, i32
  }
  func.func @transform_5(%arg0: i32) -> (i32, i32) {
    %c0_i32 = arith.constant 0 : i32
    %c0_i32_0 = arith.constant 0 : i32
    %c0_i32_1 = arith.constant 0 : i32
    return %c0_i32, %c0_i32_0 : i32, i32
  }
  func.func @transform_6(%arg0: i32) -> (i32, i32) {
    %c0_i32 = arith.constant 0 : i32
    %c0_i32_0 = arith.constant 0 : i32
    %c0_i32_1 = arith.constant 0 : i32
    return %c0_i32, %c0_i32_0 : i32, i32
  }
  func.func @transform_7(%arg0: i32) -> (i32, i32, i32) {
    %c0_i32 = arith.constant 0 : i32
    %c0_i32_0 = arith.constant 0 : i32
    %c0_i32_1 = arith.constant 0 : i32
    return %arg0, %c0_i32, %c0_i32_0 : i32, i32, i32
  }
  func.func @transform_8(%arg0: i32) -> (i32, i32, i32) {
    %c0_i32 = arith.constant 0 : i32
    %c0_i32_0 = arith.constant 0 : i32
    %c0_i32_1 = arith.constant 0 : i32
    return %arg0, %c0_i32, %c0_i32_0 : i32, i32, i32
  }
}

</mosaic_0001>

<bundles_post_ra>
// kernel: _lambda_.12
= control target key start
LH: loop header
LB: loop body
LE: loop exit
PB: predicated region body
PF: predicated region fallthrough
CT: control target
= control target key end

     0   :  { %s379_s12 = smov 0   ;;  %s402_s0 = inlined_call_operand.vmem [shape: f32[2,4,256], index: 0, kind: input, shape index: {}]   ;;  %s403_s1 = inlined_call_operand.vmem [shape: f32[4,4], index: 1, kind: input, shape index: {}]   ;;  %s404_s2 = inlined_call_operand.vmem [shape: f32[4,1], index: 2, kind: input, shape index: {}]   ;;  %s405_s3 = inlined_call_operand.vmem [shape: f32[2,4,256], index: 3, kind: output, shape index: {}]  }
   0x1 LB: > { %s321_s13 = sadd.s32 4294967295, %s355_s12   ;;  %p325_p0 = scmp.ge.s32.totalorder %s355_s12, 1  ;;  %s355_s12 = sphi %s379_s12, %s13_s12  }
   0x2   : > { %p137_p1 = scmp.lt.s32.totalorder %s355_s12, 3 }
   0x4   : > { %p138_p2 = pnand %p325_p0, %p137_p1 }
   0x5   : > { %p161_p3 = scmp.lt.s32.totalorder (!%p138_p2), %s321_s13, 1 }
   0x6   : > { %141 = sbr.rel (%p138_p2) target bundleno = 219 (0xdb), region = 32 }
   0xb   : > { %v357_v0 = vmov 0.0   ;;  %v173_v1 = vld [vmem:[%s404_s2] sm:$0xf]  ;;  %s407_s13 = smov (!%p161_p3, %s321_s13), 1  ;;  %v358_v2 = vmov 0   ;;  %vm185_vm0 = vcmask 1043456  }
   0xc   : > { %254 = vmatprep.mubr.f32.mxu0 %v357_v0  ;;  %347 = vset.pattern.permute.xlu0 %v358_v2  ;;  %s335_s16 = sshll.u32 %s407_s13, 3  ;;  %v171_v5 = vld [vmem:[%s403_s1] sm:$0xf]  ;;  %vm181_vm1 = vcmask 31744  }
   0xd   : > { %176 = vperm.xlu0 %347, %v173_v1   ;;  %s165_s19 = scalar_lea.vmem %s402_s0, %s335_s16  ;;  %s170_s24 = scalar_lea.vmem %s405_s3, %s335_s16 }
   0xe   : > { %v172_v3 = vld [vmem:[%s165_s19] sm:$0xff] }
   0xf   : > { %v180_v4 = vcombine.high %v172_v3, %v172_v3 }
  0x11   : > { %330 = vmatprep.subr.msk.mxu0 %vm185_vm0, %v180_v4 }
  0x12   : > { %331 = vmatpush1.msk.msra.mxu0 %vm185_vm0, %v172_v3 }
  0x13   : > { %332 = vmatmul.mubr.msk.f32.vlgmr.msra.gmra.mxu0 %vm181_vm1, %v171_v5 }
  0x88   : > { %v177_v6 = vpop.permute.xlu0 %176 }
  0xd3   : > { %v256_v7 = vpop.f32.mrf.mxu0 }
  0xd4   : > { %v257_v9 = vadd.f32 %v256_v7, %v177_v6 }
  0xd5   : > { %v258_v8 = vpop.f32.mrf.mxu0 }
  0xd6   : > { %v259_v10 = vadd.f32 %v258_v8, %v177_v6 }
  0xd8   : > { %v263_v11 = vcombine.low %v257_v9, %v259_v10 }
  0xda   : > { %265 = vst [vmem:[%s170_s24] sm:$0xff] %v263_v11 }
  0xdb PF: > { %s13_s12 = sadd.s32 1, %s355_s12  }
  0xdc   : > { %p10_p4 = scmp.ge.s32.totalorder %s13_s12, 4  }
  0xde   :  { %12 = sbr.rel (!%p10_p4) target bundleno = 1 (0x1), region = 62 }

// kernel: _lambda_.13
= control target key start
LH: loop header
LB: loop body
LE: loop exit
PB: predicated region body
PF: predicated region fallthrough
CT: control target
= control target key end

     0   :  { %s723_s21 = smov 0   ;;  %s822_s0 = inlined_call_operand.vmem [shape: f32[2,18,256], index: 0, kind: input, shape index: {}]   ;;  %s823_s1 = inlined_call_operand.vmem [shape: f32[32,18], index: 1, kind: input, shape index: {}]   ;;  %s824_s2 = inlined_call_operand.vmem [shape: f32[32,32], index: 2, kind: input, shape index: {}]   ;;  %s825_s3 = inlined_call_operand.vmem [shape: f32[32,1], index: 3, kind: input, shape index: {}]   ;;  %s826_s4 = inlined_call_operand.vmem [shape: f32[32,1], index: 4, kind: input, shape index: {}]   ;;  %s827_s5 = inlined_call_operand.vmem [shape: f32[32,1], index: 5, kind: input, shape index: {}]   ;;  %s828_s6 = inlined_call_operand.vmem [shape: f32[2,32,256], index: 6, kind: output, shape index: {}]  }
   0x1 LB: > { %s644_s22 = sadd.s32 4294967295, %s684_s21   ;;  %p648_p0 = scmp.ge.s32.totalorder %s684_s21, 1  ;;  %s684_s21 = sphi %s723_s21, %s16_s21  }
   0x2   : > { %p212_p1 = scmp.lt.s32.totalorder %s684_s21, 3 }
   0x4   : > { %p213_p2 = pnand %p648_p0, %p212_p1 }
   0x5   : > { %p242_p3 = scmp.lt.s32.totalorder (!%p213_p2), %s644_s22, 1 }
   0x6   : > { %216 = sbr.rel (%p213_p2) target bundleno = 455 (0x1c7), region = 44 }
   0xb   : > { %v686_v0 = vmov 0.0   ;;  %s830_s22 = smov (!%p242_p3, %s644_s22), 1  ;;  %vm275_vm0 = vcmask 1041408   ;;  %v252_v7 = vld [vmem:[%s823_s1] sm:$0xff]  ;;  %vm262_vm1 = vcmask 146432   ;;  %v253_v8 = vld [vmem:[%s823_s1 + $0x8] sm:$0xff] }
   0xc   : > { %346 = vmatprep.mubr.f32.mxu0 %v686_v0  ;;  %484 = vmatprep.mubr.f32.mxu1 %v686_v0  ;;  %s665_s23 = smul.u32 48, %s830_s22  ;;  %v254_v9 = vld [vmem:[%s823_s1 + $0x10] sm:$0xff]  ;;  %v255_v10 = vld [vmem:[%s823_s1 + $0x18] sm:$0xff]  ;;  %v383_v12 = vld [vmem:[%s825_s3] sm:$0xff]  ;;  %v687_v13 = vmov 0   ;;  %vm407_vm2 = vcmask 261120  }
   0xd   : > { %v385_v11 = vld [vmem:[%s825_s3 + $0x10] sm:$0xff]  ;;  %677 = vset.pattern.permute.xlu1 %v687_v13  ;;  %676 = vset.pattern.permute.xlu0 %v687_v13  ;;  %v386_v14 = vld [vmem:[%s825_s3 + $0x18] sm:$0xff]  ;;  %v384_v15 = vld [vmem:[%s825_s3 + $0x8] sm:$0xff] }
   0xe   : > { %s246_s26 = scalar_lea.vmem %s822_s0, %s665_s23  ;;  %399 = vperm.xlu1 %677, %v385_v11   ;;  %389 = vperm.xlu0 %676, %v383_v12   ;;  %v518_v16 = vld [vmem:[%s826_s4 + $0x8] sm:$0xff]  ;;  %v517_v17 = vld [vmem:[%s826_s4] sm:$0xff]  ;;  %v520_v18 = vld [vmem:[%s826_s4 + $0x18] sm:$0xff]  ;;  %s664_s23 = sshll.u32 %s830_s22, 6 }
   0xf   : > { %v261_v1 = vld [vmem:[%s246_s26 + $0x28] sm:$0x3]  ;;  %v260_v2 = vld [vmem:[%s246_s26 + $0x20] sm:$0x3]  ;;  %v259_v3 = vld [vmem:[%s246_s26 + $0x18] sm:$0xff] }
  0x10   : > { %652 = vmatprep.subr.msk.mxu0 %vm275_vm0, %v261_v1  ;;  %v258_v4 = vld [vmem:[%s246_s26 + $0x10] sm:$0xff]  ;;  %v257_v5 = vld [vmem:[%s246_s26 + $0x8] sm:$0xff]  ;;  %v256_v6 = vld [vmem:[%s246_s26] sm:$0xff]  ;;  %s809_s26 = scalar_lea.vmem %s828_s6, %s664_s23 }
  0x11   : > { %653 = vmatpush1.msk.msra.mxu0 %vm275_vm0, %v260_v2  ;;  %v519_v19 = vld [vmem:[%s826_s4 + $0x10] sm:$0xff]  ;;  %v550_v20 = vld [vmem:[%s827_s5 + $0x8] sm:$0xff]  ;;  %v549_v21 = vld [vmem:[%s827_s5] sm:$0xff] }
  0x12   : > { %310 = vmatprep.subr.mxu0 %v259_v3  ;;  %404 = vperm.xlu1 %677, %v386_v14   ;;  %v552_v22 = vld [vmem:[%s827_s5 + $0x18] sm:$0xff]  ;;  %v551_v23 = vld [vmem:[%s827_s5 + $0x10] sm:$0xff]  ;;  %v379_v40 = vld [vmem:[%s824_s2] sm:$0xff] }
  0x13   : > { %311 = vmatpush1.msra.mxu0 %v258_v4  ;;  %394 = vperm.xlu0 %676, %v384_v15   ;;  %v380_v41 = vld [vmem:[%s824_s2 + $0x8] sm:$0xff]  ;;  %v381_v42 = vld [vmem:[%s824_s2 + $0x10] sm:$0xff]  ;;  %v382_v43 = vld [vmem:[%s824_s2 + $0x18] sm:$0xff] }
  0x14   : > { %312 = vmatprep.subr.mxu0 %v257_v5 }
  0x15   : > { %313 = vmatpush1.msra.mxu0 %v256_v6 }
  0x16   : > { %654 = vmatmul.mubr.msk.f32.vlgmr.msra.gmra.mxu0 %vm262_vm1, %v252_v7  ;;  %528 = vperm.xlu1 %677, %v518_v16  }
  0x17   : > { %352 = vmatprep.mubr.f32.mxu0 %v686_v0  ;;  %523 = vperm.xlu0 %676, %v517_v17  }
  0x1a   : > { %655 = vmatmul.mubr.msk.f32.gmra.mxu0 %vm262_vm1, %v253_v8  ;;  %538 = vperm.xlu1 %677, %v520_v18  }
  0x1b   : > { %358 = vmatprep.mubr.f32.mxu0 %v686_v0  ;;  %533 = vperm.xlu0 %676, %v519_v19  }
  0x1e   : > { %656 = vmatmul.mubr.msk.f32.gmra.mxu0 %vm262_vm1, %v254_v9  ;;  %560 = vperm.xlu1 %677, %v550_v20  }
  0x1f   : > { %364 = vmatprep.mubr.f32.mxu0 %v686_v0  ;;  %555 = vperm.xlu0 %676, %v549_v21  }
  0x22   : > { %657 = vmatmul.mubr.msk.f32.gmra.mxu0 %vm262_vm1, %v255_v10  ;;  %570 = vperm.xlu1 %677, %v552_v22  }
  0x23   : > { %565 = vperm.xlu0 %676, %v551_v23  }
  0x89   : > { %v390_v44 = vpop.permute.xlu0 %389  ;;  %v400_v45 = vpop.permute.xlu1 %399 }
  0x8d   : > { %v405_v47 = vpop.permute.xlu1 %404 }
  0x8e   : > { %v395_v46 = vpop.permute.xlu0 %394 }
  0x91   : > { %v529_v49 = vpop.permute.xlu1 %528 }
  0x92   : > { %v524_v48 = vpop.permute.xlu0 %523 }
  0x95   : > { %v539_v56 = vpop.permute.xlu1 %538 }
  0x96   : > { %v534_v50 = vpop.permute.xlu0 %533 }
  0x99   : > { %v561_v8 = vpop.permute.xlu1 %560 }
  0x9a   : > { %v556_v61 = vpop.permute.xlu0 %555 }
  0x9e   : > { %v566_v19 = vpop.permute.xlu0 %565 }
  0xd6   : > { %v348_v24 = vpop.f32.mrf.mxu0 }
  0xd7   : > { %v371_v39 = vmax.f32 %v348_v24, 0.0 }
  0xd8   : > { %v350_v25 = vpop.f32.mrf.mxu0 }
  0xd9   : > { %v372_v38 = vmax.f32 %v350_v25, 0.0 }
  0xda   : > { %v354_v26 = vpop.f32.mrf.mxu0 }
  0xdb   : > { %v373_v37 = vmax.f32 %v354_v26, 0.0 }
  0xdc   : > { %v356_v27 = vpop.f32.mrf.mxu0 }
  0xdd   : > { %v374_v36 = vmax.f32 %v356_v27, 0.0 }
  0xde   : > { %v360_v28 = vpop.f32.mrf.mxu0 }
  0xdf   : > { %v375_v35 = vmax.f32 %v360_v28, 0.0  ;;  %v571_v28 = vpop.permute.xlu1 %570 }
  0xe0   : > { %v362_v29 = vpop.f32.mrf.mxu0 }
  0xe1   : > { %v376_v34 = vmax.f32 %v362_v29, 0.0 }
  0xe2   : > { %v366_v30 = vpop.f32.mrf.mxu0 }
  0xe3   : > { %v377_v33 = vmax.f32 %v366_v30, 0.0 }
  0xe4   : > { %v368_v31 = vpop.f32.mrf.mxu0 }
  0xe5   : > { %v378_v32 = vmax.f32 %v368_v31, 0.0 }
  0xe7   : > { %444 = vmatprep.subr.mxu1 %v378_v32 }
  0xe8   : > { %445 = vmatpush1.msra.mxu1 %v377_v33 }
  0xe9   : > { %446 = vmatprep.subr.mxu1 %v376_v34 }
  0xea   : > { %447 = vmatpush1.msra.mxu1 %v375_v35 }
  0xeb   : > { %448 = vmatprep.subr.mxu1 %v374_v36 }
  0xec   : > { %449 = vmatpush1.msra.mxu1 %v373_v37 }
  0xed   : > { %450 = vmatprep.subr.mxu1 %v372_v38 }
  0xee   : > { %451 = vmatpush1.msra.mxu1 %v371_v39 }
  0xef   : > { %658 = vmatmul.mubr.msk.f32.vlgmr.msra.gmra.mxu1 %vm407_vm2, %v379_v40 }
  0xf0   : > { %490 = vmatprep.mubr.f32.mxu1 %v686_v0 }
  0xf3   : > { %659 = vmatmul.mubr.msk.f32.gmra.mxu1 %vm407_vm2, %v380_v41 }
  0xf4   : > { %496 = vmatprep.mubr.f32.mxu1 %v686_v0 }
  0xf7   : > { %660 = vmatmul.mubr.msk.f32.gmra.mxu1 %vm407_vm2, %v381_v42 }
  0xf8   : > { %502 = vmatprep.mubr.f32.mxu1 %v686_v0 }
  0xfb   : > { %661 = vmatmul.mubr.msk.f32.gmra.mxu1 %vm407_vm2, %v382_v43 }
 0x1af   : > { %v486_v51 = vpop.f32.mrf.mxu1 }
 0x1b0   : > { %v487_v52 = vadd.f32 %v486_v51, %v390_v44 }
 0x1b1   : > { %v488_v53 = vpop.f32.mrf.mxu1 }
 0x1b2   : > { %v509_v54 = vmax.f32 %v487_v52, 0.0  ;;  %v489_v55 = vadd.f32 %v488_v53, %v390_v44 }
 0x1b3   : > { %v492_v57 = vpop.f32.mrf.mxu1 }
 0x1b4   : > { %v541_v58 = vmul.f32 %v524_v48, %v509_v54  ;;  %v510_v59 = vmax.f32 %v489_v55, 0.0  ;;  %v493_v60 = vadd.f32 %v492_v57, %v395_v46 }
 0x1b5   : > { %v494_v62 = vpop.f32.mrf.mxu1 }
 0x1b6   : > { %v573_v63 = vadd.f32 %v556_v61, %v541_v58  ;;  %v542_v0 = vmul.f32 %v524_v48, %v510_v59  ;;  %v511_v1 = vmax.f32 %v493_v60, 0.0  ;;  %v495_v2 = vadd.f32 %v494_v62, %v395_v46 }
 0x1b7   : > { %v498_v3 = vpop.f32.mrf.mxu1 }
 0x1b8   : > { %581 = vst [vmem:[%s809_s26] sm:$0xff] %v573_v63  ;;  %v574_v4 = vadd.f32 %v556_v61, %v542_v0  ;;  %v543_v5 = vmul.f32 %v529_v49, %v511_v1  ;;  %v512_v6 = vmax.f32 %v495_v2, 0.0  ;;  %v499_v7 = vadd.f32 %v498_v3, %v400_v45 }
 0x1b9   : > { %v500_v9 = vpop.f32.mrf.mxu1 }
 0x1ba   : > { %582 = vst [vmem:[%s809_s26 + $0x8] sm:$0xff] %v574_v4  ;;  %v575_v10 = vadd.f32 %v561_v8, %v543_v5  ;;  %v544_v11 = vmul.f32 %v529_v49, %v512_v6  ;;  %v513_v12 = vmax.f32 %v499_v7, 0.0  ;;  %v501_v13 = vadd.f32 %v500_v9, %v400_v45 }
 0x1bb   : > { %v504_v14 = vpop.f32.mrf.mxu1 }
 0x1bc   : > { %583 = vst [vmem:[%s809_s26 + $0x10] sm:$0xff] %v575_v10  ;;  %v576_v15 = vadd.f32 %v561_v8, %v544_v11  ;;  %v545_v16 = vmul.f32 %v534_v50, %v513_v12  ;;  %v514_v17 = vmax.f32 %v501_v13, 0.0  ;;  %v505_v18 = vadd.f32 %v504_v14, %v405_v47 }
 0x1bd   : > { %v506_v20 = vpop.f32.mrf.mxu1 }
 0x1be   : > { %584 = vst [vmem:[%s809_s26 + $0x18] sm:$0xff] %v576_v15  ;;  %v577_v21 = vadd.f32 %v566_v19, %v545_v16  ;;  %v546_v22 = vmul.f32 %v534_v50, %v514_v17  ;;  %v515_v23 = vmax.f32 %v505_v18, 0.0  ;;  %v507_v24 = vadd.f32 %v506_v20, %v405_v47 }
 0x1c0   : > { %585 = vst [vmem:[%s809_s26 + $0x20] sm:$0xff] %v577_v21  ;;  %v578_v25 = vadd.f32 %v566_v19, %v546_v22  ;;  %v547_v26 = vmul.f32 %v539_v56, %v515_v23  ;;  %v516_v27 = vmax.f32 %v507_v24, 0.0 }
 0x1c2   : > { %586 = vst [vmem:[%s809_s26 + $0x28] sm:$0xff] %v578_v25  ;;  %v579_v29 = vadd.f32 %v571_v28, %v547_v26  ;;  %v548_v30 = vmul.f32 %v539_v56, %v516_v27 }
 0x1c4   : > { %587 = vst [vmem:[%s809_s26 + $0x30] sm:$0xff] %v579_v29  ;;  %v580_v31 = vadd.f32 %v571_v28, %v548_v30 }
 0x1c6   : > { %588 = vst [vmem:[%s809_s26 + $0x38] sm:$0xff] %v580_v31 }
 0x1c7 PF: > { %s16_s21 = sadd.s32 1, %s684_s21  }
 0x1c8   : > { %p13_p4 = scmp.ge.s32.totalorder %s16_s21, 4  }
 0x1ca   :  { %15 = sbr.rel (!%p13_p4) target bundleno = 1 (0x1), region = 74 }

// kernel: _lambda_.14
= control target key start
LH: loop header
LB: loop body
LE: loop exit
PB: predicated region body
PF: predicated region fallthrough
CT: control target
= control target key end

     0   :  { %s991_s27 = smov 0   ;;  %s1397_s0 = inlined_call_operand.vmem [shape: f32[2,288,256], index: 0, kind: input, shape index: {}]   ;;  %s1398_s1 = inlined_call_operand.vmem [shape: f32[2,2,256], index: 1, kind: input, shape index: {}]   ;;  %s1399_s2 = inlined_call_operand.vmem [shape: f32[2,288], index: 2, kind: input, shape index: {}]   ;;  %s1400_s3 = inlined_call_operand.vmem [shape: f32[2,288], index: 3, kind: input, shape index: {}]   ;;  %s1401_s4 = inlined_call_operand.vmem [shape: f32[2,1], index: 4, kind: input, shape index: {}, may-alias: {4,5}]   ;;  %s1402_s5 = inlined_call_operand.vmem [shape: f32[2,1], index: 5, kind: input, shape index: {}, may-alias: {4,5}]   ;;  %s1403_s6 = inlined_call_operand.vmem [shape: f32[2,1], index: 6, kind: input, shape index: {}]   ;;  %s1404_s7 = inlined_call_operand.vmem [shape: f32[2,2,256], index: 7, kind: output, shape index: {0}]   ;;  %s1405_s8 = inlined_call_operand.vmem [shape: f32[2,1,1], index: 8, kind: output, shape index: {1}]  }
   0x1 LB: > { %s895_s28 = sadd.s32 4294967295, %s941_s27   ;;  %p899_p0 = scmp.ge.s32.totalorder %s941_s27, 1  ;;  %s941_s27 = sphi %s991_s27, %s19_s27  }
   0x2   : > { %p275_p1 = scmp.lt.s32.totalorder %s941_s27, 3 }
   0x4   : > { %p276_p2 = pnand %p899_p0, %p275_p1 }
   0x5   : > { %p317_p3 = scmp.lt.s32.totalorder (!%p276_p2), %s895_s28, 1 }
   0x6   : > { %279 = sbr.rel (%p276_p2) target bundleno = 453 (0x1c5), region = 48 }
   0xb   : > { %v419_v0 = vlaneseq  ;;  %v943_v1 = vmov 1983009808   ;;  %v944_v3 = vmov 0.0   ;;  %v408_v4 = vld [vmem:[%s1401_s4] sm:$0x3]  ;;  %s1407_s28 = smov (!%p317_p3, %s895_s28), 1 }
   0xc   : > { %v417_v2 = vunpack.c.l.s4 %v943_v1  ;;  %571 = vmatprep.mubr.f32.mxu1 %v944_v3  ;;  %v945_v6 = vmov 0   ;;  %s911_s9 = smul.u32 576, %s1407_s28  ;;  %v1009_v8 = vld [vmem:[%s1399_s2] sm:$0x3f]  ;;  %vm433_vm0 = vcmask 261120   ;;  %vm788_vm1 = vcmask 1041408   ;;  %s334_s29 = scalar_lea.vmem %s1405_s8, %s1407_s28 }
   0xd   : > { %v420_v5 = vshrl.u32 %v419_v0, 7  ;;  %923 = vset.pattern.permute.xlu0 %v945_v6  ;;  %924 = vset.pattern.permute.xlu1 %v945_v6  ;;  %v748_v9 = vld [vmem:[%s1403_s6] sm:$0x3]  ;;  %v415_v39 = vcombine.high %v1009_v8, %v1009_v8  ;;  %s909_s21 = sshll.u32 %s1407_s28, 2  ;;  %vm801_vm2 = vcmask 0  }
   0xe   : > { %v418_v7 = vunpack.c.0.s8 %v417_v2  ;;  %411 = vperm.xlu0 %923, %v408_v4   ;;  %s1019_s16 = scalar_lea.vmem %s1397_s0, %s911_s9  ;;  %s326_s24 = scalar_lea.vmem %s1398_s1, %s909_s21 }
   0xf   : > { %v1022_v11 = vld [vmem:[%s1019_s16 + $0xf8] sm:$0xff]  ;;  %v1025_v12 = vld [vmem:[%s1019_s16 + $0xf0] sm:$0xff]  ;;  %v1028_v13 = vld [vmem:[%s1019_s16 + $0xe8] sm:$0xff]  ;;  %s331_s10 = scalar_lea.vmem %s1404_s7, %s909_s21 }
  0x10   : > { %v1014_v10 = vsub.s32 %v418_v7, %v420_v5  ;;  %436 = vmatprep.subr.mxu0 %v1022_v11  ;;  %v1036_v15 = vld [vmem:[%s1019_s16 + $0xe0] sm:$0xff]  ;;  %v1040_v16 = vld [vmem:[%s1019_s16 + $0xd8] sm:$0xff]  ;;  %v1046_v18 = vld [vmem:[%s1019_s16 + $0xd0] sm:$0xff] }
  0x11   : > { %437 = vmatpush1.msra.mxu0 %v1025_v12  ;;  %v1050_v19 = vld [vmem:[%s1019_s16 + $0xc8] sm:$0xff]  ;;  %v1054_v20 = vld [vmem:[%s1019_s16 + $0xc0] sm:$0xff]  ;;  %v1058_v21 = vld [vmem:[%s1019_s16 + $0xb8] sm:$0xff] }
  0x12   : > { %v1032_v14 = vrot.slane %v1009_v8, %v1014_v10  ;;  %753 = vperm.xlu0 %923, %v748_v9   ;;  %438 = vmatprep.subr.mxu0 %v1028_v13  ;;  %v1062_v22 = vld [vmem:[%s1019_s16 + $0xb0] sm:$0xff]  ;;  %v1066_v23 = vld [vmem:[%s1019_s16 + $0xa8] sm:$0xff]  ;;  %v1070_v24 = vld [vmem:[%s1019_s16 + $0xa0] sm:$0xff]  ;;  %v429_v48 = vrot.slane %v415_v39, %v1014_v10 }
  0x13   : > { %439 = vmatpush1.msra.mxu0 %v1036_v15  ;;  %v1074_v25 = vld [vmem:[%s1019_s16 + $0x98] sm:$0xff]  ;;  %v1078_v26 = vld [vmem:[%s1019_s16 + $0x90] sm:$0xff]  ;;  %v1082_v27 = vld [vmem:[%s1019_s16 + $0x88] sm:$0xff] }
  0x14   : > { %v430_v17 = vcombine.high %v1032_v14, %v1032_v14  ;;  %440 = vmatprep.subr.mxu0 %v1040_v16  ;;  %v1086_v28 = vld [vmem:[%s1019_s16 + $0x80] sm:$0xff]  ;;  %v1090_v29 = vld [vmem:[%s1019_s16 + $0x78] sm:$0xff]  ;;  %v1094_v30 = vld [vmem:[%s1019_s16 + $0x70] sm:$0xff] }
  0x15   : > { %441 = vmatpush1.msra.mxu0 %v1046_v18  ;;  %v1098_v31 = vld [vmem:[%s1019_s16 + $0x68] sm:$0xff]  ;;  %v1102_v32 = vld [vmem:[%s1019_s16 + $0x60] sm:$0xff]  ;;  %v1106_v33 = vld [vmem:[%s1019_s16 + $0x58] sm:$0xff] }
  0x16   : > { %500 = vmatprep.mubr.f32.mxu0 %v430_v17  ;;  %442 = vmatprep.subr.mxu0 %v1050_v19  ;;  %v1110_v34 = vld [vmem:[%s1019_s16 + $0x50] sm:$0xff]  ;;  %v1113_v35 = vld [vmem:[%s1019_s16 + $0x238] sm:$0xff]  ;;  %v1120_v37 = vld [vmem:[%s1019_s16 + $0x48] sm:$0xff] }
  0x17   : > { %443 = vmatpush1.msra.mxu0 %v1054_v20  ;;  %v1116_v36 = vld [vmem:[%s1019_s16 + $0x230] sm:$0xff]  ;;  %531 = vmatprep.subr.mxu1 %v1113_v35  ;;  %v1124_v38 = vld [vmem:[%s1019_s16 + $0x228] sm:$0xff]  ;;  %v1130_v40 = vld [vmem:[%s1019_s16 + $0x40] sm:$0xff] }
  0x18   : > { %444 = vmatprep.subr.mxu0 %v1058_v21  ;;  %532 = vmatpush1.msra.mxu1 %v1116_v36  ;;  %v1134_v41 = vld [vmem:[%s1019_s16 + $0x220] sm:$0xff]  ;;  %v1137_v42 = vld [vmem:[%s1019_s16 + $0x218] sm:$0xff]  ;;  %v1145_v44 = vld [vmem:[%s1019_s16 + $0x210] sm:$0xff] }
  0x19   : > { %445 = vmatpush1.msra.mxu0 %v1062_v22  ;;  %v1141_v43 = vld [vmem:[%s1019_s16 + $0x38] sm:$0xff]  ;;  %533 = vmatprep.subr.mxu1 %v1124_v38  ;;  %v1149_v45 = vld [vmem:[%s1019_s16 + $0x30] sm:$0xff]  ;;  %v1153_v46 = vld [vmem:[%s1019_s16 + $0x208] sm:$0xff] }
  0x1a   : > { %446 = vmatprep.subr.mxu0 %v1066_v23  ;;  %534 = vmatpush1.msra.mxu1 %v1134_v41  ;;  %v1157_v47 = vld [vmem:[%s1019_s16 + $0x28] sm:$0xff]  ;;  %v1162_v49 = vld [vmem:[%s1019_s16 + $0x200] sm:$0xff]  ;;  %v1171_v51 = vld [vmem:[%s1019_s16 + $0x18] sm:$0xff] }
  0x1b   : > { %447 = vmatpush1.msra.mxu0 %v1070_v24  ;;  %535 = vmatprep.subr.mxu1 %v1137_v42  ;;  %v1166_v50 = vld [vmem:[%s1019_s16 + $0x20] sm:$0xff]  ;;  %v1176_v52 = vld [vmem:[%s1019_s16 + $0x10] sm:$0xff]  ;;  %v1181_v53 = vld [vmem:[%s1019_s16 + $0x8] sm:$0xff] }
  0x1c   : > { %448 = vmatprep.subr.mxu0 %v1074_v25  ;;  %536 = vmatpush1.msra.mxu1 %v1145_v44  ;;  %v1186_v54 = vld [vmem:[%s1019_s16] sm:$0xff]  ;;  %v1191_v55 = vld [vmem:[%s1019_s16 + $0x1f8] sm:$0xff]  ;;  %v1196_v56 = vld [vmem:[%s1019_s16 + $0x1f0] sm:$0xff] }
  0x1d   : > { %449 = vmatpush1.msra.mxu0 %v1078_v26  ;;  %537 = vmatprep.subr.mxu1 %v1153_v46  ;;  %v1201_v57 = vld [vmem:[%s1019_s16 + $0x1e8] sm:$0xff]  ;;  %v1206_v58 = vld [vmem:[%s1019_s16 + $0x1e0] sm:$0xff]  ;;  %v1211_v59 = vld [vmem:[%s1019_s16 + $0x1d8] sm:$0xff] }
  0x1e   : > { %450 = vmatprep.subr.mxu0 %v1082_v27  ;;  %538 = vmatpush1.msra.mxu1 %v1162_v49  ;;  %v1216_v60 = vld [vmem:[%s1019_s16 + $0x1d0] sm:$0xff]  ;;  %v1221_v61 = vld [vmem:[%s1019_s16 + $0x1c8] sm:$0xff]  ;;  %v1226_v62 = vld [vmem:[%s1019_s16 + $0x1c0] sm:$0xff] }
  0x1f   : > { %451 = vmatpush1.msra.mxu0 %v1086_v28  ;;  %905 = vmatmul.mubr.msk.f32.vlgmr.msra.gmra.mxu1 %vm433_vm0, %v429_v48  ;;  %v1231_v63 = vld [vmem:[%s1019_s16 + $0x1b8] sm:$0xff]  ;;  %v1236_v0 = vld [vmem:[%s1019_s16 + $0x1b0] sm:$0xff]  ;;  %v1241_v1 = vld [vmem:[%s1019_s16 + $0x1a8] sm:$0xff] }
  0x20   : > { %452 = vmatprep.subr.mxu0 %v1090_v29  ;;  %606 = vmatprep.subr.mxu1 %v1022_v11  ;;  %v1246_v2 = vld [vmem:[%s1019_s16 + $0x1a0] sm:$0xff]  ;;  %v1251_v4 = vld [vmem:[%s1019_s16 + $0x198] sm:$0xff]  ;;  %v1256_v5 = vld [vmem:[%s1019_s16 + $0x190] sm:$0xff] }
  0x21   : > { %453 = vmatpush1.msra.mxu0 %v1094_v30  ;;  %607 = vmatpush1.msra.mxu1 %v1025_v12  ;;  %v1261_v6 = vld [vmem:[%s1019_s16 + $0x188] sm:$0xff]  ;;  %v1266_v7 = vld [vmem:[%s1019_s16 + $0x180] sm:$0xff]  ;;  %v1271_v8 = vld [vmem:[%s1019_s16 + $0x178] sm:$0xff] }
  0x22   : > { %454 = vmatprep.subr.mxu0 %v1098_v31  ;;  %608 = vmatprep.subr.mxu1 %v1028_v13  ;;  %v1276_v9 = vld [vmem:[%s1019_s16 + $0x170] sm:$0xff]  ;;  %v1281_v11 = vld [vmem:[%s1019_s16 + $0x168] sm:$0xff]  ;;  %v1286_v12 = vld [vmem:[%s1019_s16 + $0x160] sm:$0xff] }
  0x23   : > { %455 = vmatpush1.msra.mxu0 %v1102_v32  ;;  %609 = vmatpush1.msra.mxu1 %v1036_v15  ;;  %v1291_v13 = vld [vmem:[%s1019_s16 + $0x158] sm:$0xff]  ;;  %v1296_v15 = vld [vmem:[%s1019_s16 + $0x150] sm:$0xff]  ;;  %v1306_v17 = vld [vmem:[%s1019_s16 + $0x140] sm:$0xff] }
  0x24   : > { %456 = vmatprep.subr.mxu0 %v1106_v33  ;;  %610 = vmatprep.subr.mxu1 %v1040_v16  ;;  %v1301_v16 = vld [vmem:[%s1019_s16 + $0x148] sm:$0xff] }
  0x25   : > { %457 = vmatpush1.msra.mxu0 %v1110_v34  ;;  %611 = vmatpush1.msra.mxu1 %v1046_v18  ;;  %v1311_v18 = vld [vmem:[%s1019_s16 + $0x138] sm:$0xff] }
  0x26   : > { %458 = vmatprep.subr.mxu0 %v1120_v37  ;;  %612 = vmatprep.subr.mxu1 %v1050_v19  ;;  %v1316_v19 = vld [vmem:[%s1019_s16 + $0x130] sm:$0xff] }
  0x27   : > { %459 = vmatpush1.msra.mxu0 %v1130_v40  ;;  %613 = vmatpush1.msra.mxu1 %v1054_v20  ;;  %v373_v20 = vld [vmem:[%s1019_s16 + $0x128] sm:$0xff] }
  0x28   : > { %460 = vmatprep.subr.mxu0 %v1141_v43  ;;  %614 = vmatprep.subr.mxu1 %v1058_v21  ;;  %v372_v21 = vld [vmem:[%s1019_s16 + $0x120] sm:$0xff] }
  0x29   : > { %461 = vmatpush1.msra.mxu0 %v1149_v45  ;;  %615 = vmatpush1.msra.mxu1 %v1062_v22  ;;  %v371_v22 = vld [vmem:[%s1019_s16 + $0x118] sm:$0xff] }
  0x2a   : > { %462 = vmatprep.subr.mxu0 %v1157_v47  ;;  %616 = vmatprep.subr.mxu1 %v1066_v23  ;;  %v370_v23 = vld [vmem:[%s1019_s16 + $0x110] sm:$0xff] }
  0x2b   : > { %463 = vmatpush1.msra.mxu0 %v1166_v50  ;;  %617 = vmatpush1.msra.mxu1 %v1070_v24  ;;  %v369_v24 = vld [vmem:[%s1019_s16 + $0x108] sm:$0xff] }
  0x2c   : > { %464 = vmatprep.subr.mxu0 %v1171_v51  ;;  %618 = vmatprep.subr.mxu1 %v1074_v25  ;;  %v578_v25 = vld [vmem:[%s1400_s3] sm:$0x3f] }
  0x2d   : > { %465 = vmatpush1.msra.mxu0 %v1176_v52  ;;  %619 = vmatpush1.msra.mxu1 %v1078_v26  ;;  %v368_v26 = vld [vmem:[%s1019_s16 + $0x100] sm:$0xff] }
  0x2e   : > { %466 = vmatprep.subr.mxu0 %v1181_v53  ;;  %620 = vmatprep.subr.mxu1 %v1082_v27  ;;  %v593_v27 = vrot.slane %v578_v25, %v1014_v10 }
  0x2f   : > { %467 = vmatpush1.msra.mxu0 %v1186_v54  ;;  %621 = vmatpush1.msra.mxu1 %v1086_v28 }
  0x30   : > { %468 = vmatprep.subr.mxu0 %v1191_v55  ;;  %622 = vmatprep.subr.mxu1 %v1090_v29  ;;  %v601_v28 = vcombine.high %v593_v27, %v593_v27  ;;  %v586_v29 = vcombine.high %v578_v25, %v578_v25 }
  0x31   : > { %469 = vmatpush2.msra.mxu0 %v1196_v56  ;;  %623 = vmatpush1.msra.mxu1 %v1094_v30 }
  0x32   : > { %470 = vmatprep.subr.mxu0 %v1201_v57  ;;  %624 = vmatprep.subr.mxu1 %v1098_v31 }
  0x33   : > { %471 = vmatpush2.msra.mxu0 %v1206_v58  ;;  %625 = vmatpush1.msra.mxu1 %v1102_v32 }
  0x34   : > { %472 = vmatprep.subr.mxu0 %v1211_v59  ;;  %626 = vmatprep.subr.mxu1 %v1106_v33 }
  0x35   : > { %473 = vmatpush2.msra.mxu0 %v1216_v60  ;;  %627 = vmatpush1.msra.mxu1 %v1110_v34 }
  0x36   : > { %474 = vmatprep.subr.mxu0 %v1221_v61  ;;  %628 = vmatprep.subr.mxu1 %v1120_v37 }
  0x37   : > { %475 = vmatpush2.msra.mxu0 %v1226_v62  ;;  %629 = vmatpush1.msra.mxu1 %v1130_v40 }
  0x38   : > { %476 = vmatprep.subr.mxu0 %v1231_v63  ;;  %630 = vmatprep.subr.mxu1 %v1141_v43 }
  0x39   : > { %477 = vmatpush2.msra.mxu0 %v1236_v0  ;;  %631 = vmatpush1.msra.mxu1 %v1149_v45 }
  0x3a   : > { %478 = vmatprep.subr.mxu0 %v1241_v1  ;;  %632 = vmatprep.subr.mxu1 %v1157_v47 }
  0x3b   : > { %479 = vmatpush2.msra.mxu0 %v1246_v2  ;;  %633 = vmatpush1.msra.mxu1 %v1166_v50 }
  0x3c   : > { %480 = vmatprep.subr.mxu0 %v1251_v4  ;;  %634 = vmatprep.subr.mxu1 %v1171_v51  ;;  %v579_v51 = vld [vmem:[%s1402_s5] sm:$0x3] }
  0x3d   : > { %481 = vmatpush2.msra.mxu0 %v1256_v5  ;;  %635 = vmatpush1.msra.mxu1 %v1176_v52 }
  0x3e   : > { %482 = vmatprep.subr.mxu0 %v1261_v6  ;;  %636 = vmatprep.subr.mxu1 %v1181_v53 }
  0x3f   : > { %483 = vmatpush2.msra.mxu0 %v1266_v7  ;;  %637 = vmatpush1.msra.mxu1 %v1186_v54 }
  0x40   : > { %484 = vmatprep.subr.mxu0 %v1271_v8  ;;  %638 = vmatprep.subr.mxu1 %v1191_v55 }
  0x41   : > { %485 = vmatpush2.msra.mxu0 %v1276_v9  ;;  %639 = vmatpush2.msra.mxu1 %v1196_v56 }
  0x42   : > { %486 = vmatprep.subr.mxu0 %v1281_v11  ;;  %640 = vmatprep.subr.mxu1 %v1201_v57 }
  0x43   : > { %487 = vmatpush2.msra.mxu0 %v1286_v12  ;;  %641 = vmatpush2.msra.mxu1 %v1206_v58 }
  0x44   : > { %488 = vmatprep.subr.mxu0 %v1291_v13  ;;  %642 = vmatprep.subr.mxu1 %v1211_v59 }
  0x45   : > { %489 = vmatpush2.msra.mxu0 %v1296_v15  ;;  %643 = vmatpush2.msra.mxu1 %v1216_v60 }
  0x46   : > { %490 = vmatprep.subr.mxu0 %v1301_v16  ;;  %644 = vmatprep.subr.mxu1 %v1221_v61 }
  0x47   : > { %491 = vmatpush2.msra.mxu0 %v1306_v17  ;;  %645 = vmatpush2.msra.mxu1 %v1226_v62 }
  0x48   : > { %492 = vmatprep.subr.mxu0 %v1311_v18  ;;  %646 = vmatprep.subr.mxu1 %v1231_v63 }
  0x49   : > { %493 = vmatpush2.msra.mxu0 %v1316_v19  ;;  %647 = vmatpush2.msra.mxu1 %v1236_v0 }
  0x4a   : > { %494 = vmatprep.subr.mxu0 %v373_v20  ;;  %648 = vmatprep.subr.mxu1 %v1241_v1 }
  0x4b   : > { %495 = vmatpush2.msra.mxu0 %v372_v21  ;;  %670 = vmatprep.mubr.f32.mxu1 %v601_v28 }
  0x4c   : > { %496 = vmatprep.subr.mxu0 %v371_v22  ;;  %649 = vmatpush2.msra.mxu1 %v1246_v2 }
  0x4d   : > { %497 = vmatpush2.msra.mxu0 %v370_v23  ;;  %650 = vmatprep.subr.mxu1 %v1251_v4 }
  0x4e   : > { %498 = vmatprep.subr.mxu0 %v369_v24  ;;  %651 = vmatpush2.msra.mxu1 %v1256_v5 }
  0x4f   : > { %499 = vmatpush2.msra.mxu0 %v368_v26  ;;  %652 = vmatprep.subr.mxu1 %v1261_v6  ;;  %v758_v6 = vld [vmem:[%s326_s24] sm:$0xf] }
  0x50   : > { %501 = vmatmul.mubr.f32.vlgmr.msra.gmra.mxu0 %v1032_v14  ;;  %701 = vmatprep.subr.mxu0 %v1113_v35  ;;  %v600_v14 = vrot.slane %v586_v29, %v1014_v10 }
  0x51   : > { %702 = vmatpush1.msra.mxu0 %v1116_v36  ;;  %741 = vmatprep.mubr.f32.mxu0 %v944_v3 }
  0x52   : > { %703 = vmatprep.subr.mxu0 %v1124_v38  ;;  %653 = vmatpush2.msra.mxu1 %v1266_v7 }
  0x53   : > { %704 = vmatpush1.msra.mxu0 %v1134_v41  ;;  %654 = vmatprep.subr.mxu1 %v1271_v8 }
  0x54   : > { %705 = vmatprep.subr.mxu0 %v1137_v42  ;;  %655 = vmatpush2.msra.mxu1 %v1276_v9 }
  0x55   : > { %706 = vmatpush1.msra.mxu0 %v1145_v44  ;;  %656 = vmatprep.subr.mxu1 %v1281_v11 }
  0x56   : > { %707 = vmatprep.subr.mxu0 %v1153_v46  ;;  %657 = vmatpush2.msra.mxu1 %v1286_v12 }
  0x57   : > { %708 = vmatpush1.msra.mxu0 %v1162_v49  ;;  %658 = vmatprep.subr.mxu1 %v1291_v13 }
  0x58   : > { %906 = vmatmul.mubr.msk.f32.vlgmr.msra.gmra.mxu0 %vm433_vm0, %v600_v14  ;;  %659 = vmatpush2.msra.mxu1 %v1296_v15 }
  0x59   : > { %660 = vmatprep.subr.mxu1 %v1301_v16 }
  0x5a   : > { %661 = vmatpush2.msra.mxu1 %v1306_v17 }
  0x5b   : > { %662 = vmatprep.subr.mxu1 %v1311_v18 }
  0x5c   : > { %663 = vmatpush2.msra.mxu1 %v1316_v19 }
  0x5d   : > { %664 = vmatprep.subr.mxu1 %v373_v20 }
  0x5e   : > { %665 = vmatpush2.msra.mxu1 %v372_v21 }
  0x5f   : > { %666 = vmatprep.subr.mxu1 %v371_v22 }
  0x60   : > { %667 = vmatpush2.msra.mxu1 %v370_v23 }
  0x61   : > { %668 = vmatprep.subr.mxu1 %v369_v24 }
  0x62   : > { %669 = vmatpush2.msra.mxu1 %v368_v26 }
  0x63   : > { %671 = vmatmul.mubr.f32.vlgmr.msra.gmra.mxu1 %v593_v27 }
  0x89   : > { %v412_v3 = vpop.permute.xlu0 %411 }
  0x8d   : > { %v754_v39 = vpop.permute.xlu0 %753 }
  0xdf   : > { %v573_v31 = vpop.f32.mrf.mxu1 }
  0xe1   : > { %v575_v36 = vpop.f32.mrf.mxu1 }
 0x110   : > { %v502_v30 = vpop.f32.mrf.mxu0 }
 0x111   : > { %v503_v32 = vadd.f32 %v502_v30, %v412_v3 }
 0x112   : > { %v504_v33 = vpop.f32.mrf.mxu0 }
 0x113   : > { %v574_v34 = vadd.f32 %v573_v31, %v503_v32  ;;  %v505_v35 = vadd.f32 %v504_v33, %v412_v3 }
 0x115   : > { %927 = vtanh.f32 %v574_v34  ;;  %v576_v37 = vadd.f32 %v575_v36, %v505_v35 }
 0x117   : > { %929 = vtanh.f32 %v576_v37 }
 0x118   : > { %v743_v56 = vpop.f32.mrf.mxu0 }
 0x11a   : > { %v745_v63 = vpop.f32.mrf.mxu0 }
 0x122   : > { %v928_v38 = vpop.eup %927 }
 0x123   : > { %v756_v40 = vmul.f32 %v928_v38, %v754_v39  ;;  %v672_v52 = vpop.f32.mrf.mxu1 }
 0x124   : > { %v930_v41 = vpop.eup %929 }
 0x125   : > { %v771_v42 = vmul.f32 1.442695, %v756_v40  ;;  %v757_v43 = vmul.f32 %v930_v41, %v754_v39  ;;  %v789_v45 = vsel %vm788_vm1, %v756_v40, 0.0  ;;  %v674_v58 = vpop.f32.mrf.mxu1 }
 0x127   : > { %v773_v44 = vmul.f32 1.442695, %v757_v43  ;;  %v790_v46 = vsel %vm788_vm1, %v757_v43, 0.0  ;;  %931 = vpow2.f32 %v771_v42 }
 0x128   : > { %v791_v47 = vadd.f32 %v790_v46, %v789_v45 }
 0x129   : > { %933 = vpow2.f32 %v773_v44 }
 0x12a   : > { %792 = vadd.xlane.f32.xlu1 %v791_v47 }
 0x134   : > { %v932_v48 = vpop.eup %931 }
 0x136   : > { %v934_v49 = vpop.eup %933 }
 0x137   : > { %v777_v50 = vcombine.low %v932_v48, %v934_v49 }
 0x139   : > { %v784_v11 = vrot.slane %v777_v50, %v1014_v10 }
 0x13b   : > { %582 = vperm.xlu1 %924, %v579_v51  }
 0x1b3   : > { %v793_v53 = vpop.xlane.xlu1 %792 }
 0x1b4   : > { %v794_v54 = vsel %vm788_vm1, %v793_v53, 0.0 }
 0x1b5   : > { %v795_v55 = vrot.slane %v794_v54, 4 }
 0x1b7   : > { %v796_v57 = vadd.f32 %v795_v55, %v794_v54  ;;  %v583_v59 = vpop.permute.xlu1 %582 }
 0x1b8   : > { %v673_v60 = vadd.f32 %v672_v52, %v583_v59  ;;  %v675_v61 = vadd.f32 %v674_v58, %v583_v59 }
 0x1b9   : > { %v797_v62 = vrot.slane %v796_v57, 2 }
 0x1ba   : > { %v744_v0 = vadd.f32 %v743_v56, %v673_v60  ;;  %v746_v1 = vadd.f32 %v745_v63, %v675_v61 }
 0x1bb   : > { %v798_v2 = vadd.f32 %v797_v62, %v796_v57 }
 0x1bc   : > { %v761_v4 = vcombine.low %v744_v0, %v746_v1 }
 0x1bd   : > { %v799_v5 = vrot.slane %v798_v2, 1 }
 0x1be   : > { %v768_v7 = vrot.slane %v761_v4, %v1014_v10 }
 0x1bf   : > { %v800_v8 = vadd.f32 %v799_v5, %v798_v2 }
 0x1c0   : > { %v770_v9 = vadd.f32 %v768_v7, %v758_v6 }
 0x1c1   : > { %802 = vst.msk [vmem:[%s334_s29] sm:$0x1] %vm801_vm2, %v800_v8 }
 0x1c2   : > { %v786_v12 = vmul.f32 %v784_v11, %v770_v9 }
 0x1c4   : > { %787 = vst [vmem:[%s331_s10] sm:$0xf] %v786_v12 }
 0x1c5 PF: > { %s19_s27 = sadd.s32 1, %s941_s27  }
 0x1c6   : > { %p16_p4 = scmp.ge.s32.totalorder %s19_s27, 4  }
 0x1c8   :  { %18 = sbr.rel (!%p16_p4) target bundleno = 1 (0x1), region = 93 }

// kernel: _lambda_.18
= control target key start
LH: loop header
LB: loop body
LE: loop exit
PB: predicated region body
PF: predicated region fallthrough
CT: control target
= control target key end

     0   :  { %s363_s12 = smov 0   ;;  %s386_s0 = inlined_call_operand.vmem [shape: f32[2,8,64], index: 0, kind: input, shape index: {}]   ;;  %s387_s1 = inlined_call_operand.vmem [shape: f32[8,8], index: 1, kind: input, shape index: {}]   ;;  %s388_s2 = inlined_call_operand.vmem [shape: f32[8,1], index: 2, kind: input, shape index: {}]   ;;  %s389_s3 = inlined_call_operand.vmem [shape: f32[2,8,64], index: 3, kind: output, shape index: {}]  }
   0x1 LB: > { %s303_s13 = sadd.s32 4294967295, %s338_s12   ;;  %p307_p0 = scmp.ge.s32.totalorder %s338_s12, 1  ;;  %s338_s12 = sphi %s363_s12, %s13_s12  }
   0x2   : > { %p136_p1 = scmp.lt.s32.totalorder %s338_s12, 3 }
   0x4   : > { %p137_p2 = pnand %p307_p0, %p136_p1 }
   0x5   : > { %p158_p3 = scmp.lt.s32.totalorder (!%p137_p2), %s303_s13, 1 }
   0x6   : > { %140 = sbr.rel (%p137_p2) target bundleno = 212 (0xd4), region = 32 }
   0xb   : > { %v340_v0 = vmov 0.0   ;;  %vm341_vm0 = vmmov 0   ;;  %v168_v1 = vld [vmem:[%s388_s2] sm:$0xff]  ;;  %s391_s13 = smov (!%p158_p3, %s303_s13), 1  ;;  %v342_v2 = vmov 0   ;;  %vm174_vm1 = vcmask 64512  }
   0xc   : > { %315 = vmatprep.subr.mxu0 %v340_v0  ;;  %317 = vmatprep.mubr.msk.f32.mxu0 %vm341_vm0, %v340_v0  ;;  %s308_s16 = sshll.u32 %s391_s13, 3  ;;  %v166_v3 = vld [vmem:[%s387_s1] sm:$0xff]  ;;  %vm248_vm2 = vcmask 523264  }
   0xd   : > { %331 = vset.pattern.permute.xlu0 %v342_v2  ;;  %s161_s19 = scalar_lea.vmem %s386_s0, %s308_s16  ;;  %s165_s24 = scalar_lea.vmem %s389_s3, %s308_s16 }
   0xe   : > { %171 = vperm.xlu0 %331, %v168_v1   ;;  %v167_v4 = vld [vmem:[%s161_s19] sm:$0xff] }
   0xf   : > { %316 = vmatpush3.msra.mxu0 %v167_v4 }
  0x10   : > { %318 = vmatmul.mubr.msk.f32.vlgmr.msra.gmra.mxu0 %vm174_vm1, %v166_v3 }
  0x89   : > { %v172_v5 = vpop.permute.xlu0 %171 }
  0xd0   : > { %v244_v6 = vpop.f32.mrf.mxu0 }
  0xd1   : > { %v245_v7 = vadd.f32 %v244_v6, %v172_v5 }
  0xd2   : > { %v319_v8 = vpop.f32.mrf.mxu0 }
  0xd3   : > { %249 = vst.msk [vmem:[%s165_s24] sm:$0xff] %vm248_vm2, %v245_v7 }
  0xd4 PF: > { %s13_s12 = sadd.s32 1, %s338_s12  }
  0xd5   : > { %p10_p4 = scmp.ge.s32.totalorder %s13_s12, 4  }
  0xd7   :  { %12 = sbr.rel (!%p10_p4) target bundleno = 1 (0x1), region = 62 }

// kernel: _lambda_.19
= control target key start
LH: loop header
LB: loop body
LE: loop exit
PB: predicated region body
PF: predicated region fallthrough
CT: control target
= control target key end

     0   :  { %s736_s21 = smov 0   ;;  %s829_s0 = inlined_call_operand.vmem [shape: f32[2,36,64], index: 0, kind: input, shape index: {}]   ;;  %s830_s1 = inlined_call_operand.vmem [shape: f32[32,36], index: 1, kind: input, shape index: {}]   ;;  %s831_s2 = inlined_call_operand.vmem [shape: f32[32,32], index: 2, kind: input, shape index: {}]   ;;  %s832_s3 = inlined_call_operand.vmem [shape: f32[32,1], index: 3, kind: input, shape index: {}]   ;;  %s833_s4 = inlined_call_operand.vmem [shape: f32[32,1], index: 4, kind: input, shape index: {}]   ;;  %s834_s5 = inlined_call_operand.vmem [shape: f32[32,1], index: 5, kind: input, shape index: {}]   ;;  %s835_s6 = inlined_call_operand.vmem [shape: f32[2,32,64], index: 6, kind: output, shape index: {}]  }
   0x1 LB: > { %s613_s22 = sadd.s32 4294967295, %s698_s21   ;;  %p617_p0 = scmp.ge.s32.totalorder %s698_s21, 1  ;;  %s698_s21 = sphi %s736_s21, %s16_s21  }
   0x2   : > { %p212_p1 = scmp.lt.s32.totalorder %s698_s21, 3 }
   0x4   : > { %p213_p2 = pnand %p617_p0, %p212_p1 }
   0x5   : > { %p242_p3 = scmp.lt.s32.totalorder (!%p213_p2), %s613_s22, 1 }
   0x6   : > { %216 = sbr.rel (%p213_p2) target bundleno = 441 (0x1b9), region = 44 }
   0xb   : > { %v252_v0 = vld [vmem:[%s830_s1] sm:$0xff]  ;;  %vm261_vm0 = vcmask 293888   ;;  %s837_s22 = smov (!%p242_p3, %s613_s22), 1  ;;  %vm274_vm1 = vcmask 1043456   ;;  %v253_v6 = vld [vmem:[%s830_s1 + $0x8] sm:$0xff]  ;;  %v254_v7 = vld [vmem:[%s830_s1 + $0x10] sm:$0xff] }
   0xc   : > { %660 = vmatprep.mubr.msk.f32.mxu0 %vm261_vm0, %v252_v0  ;;  %s680_s25 = smul.u32 40, %s837_s22  ;;  %v255_v8 = vld [vmem:[%s830_s1 + $0x18] sm:$0xff]  ;;  %v367_v9 = vld [vmem:[%s831_s2] sm:$0xff]  ;;  %vm395_vm2 = vcmask 261120   ;;  %v373_v10 = vld [vmem:[%s832_s3 + $0x10] sm:$0xff]  ;;  %v700_v12 = vmov 0  }
   0xd   : > { %674 = vmatprep.mubr.msk.f32.mxu1 %vm395_vm2, %v367_v9  ;;  %v371_v11 = vld [vmem:[%s832_s3] sm:$0xff]  ;;  %691 = vset.pattern.permute.xlu1 %v700_v12  ;;  %v374_v13 = vld [vmem:[%s832_s3 + $0x18] sm:$0xff]  ;;  %v372_v14 = vld [vmem:[%s832_s3 + $0x8] sm:$0xff]  ;;  %s632_s23 = sshll.u32 %s837_s22, 5  ;;  %vm553_vm3 = vcmask 523264  }
   0xe   : > { %s246_s28 = scalar_lea.vmem %s829_s0, %s680_s25  ;;  %690 = vset.pattern.permute.xlu0 %v700_v12  ;;  %387 = vperm.xlu1 %691, %v373_v10   ;;  %v498_v15 = vld [vmem:[%s833_s4 + $0x8] sm:$0xff]  ;;  %v497_v16 = vld [vmem:[%s833_s4] sm:$0xff]  ;;  %v500_v17 = vld [vmem:[%s833_s4 + $0x18] sm:$0xff]  ;;  %s251_s26 = scalar_lea.vmem %s835_s6, %s632_s23 }
   0xf   : > { %v260_v1 = vld [vmem:[%s246_s28 + $0x20] sm:$0xf]  ;;  %v259_v2 = vld [vmem:[%s246_s28 + $0x18] sm:$0xff]  ;;  %v258_v3 = vld [vmem:[%s246_s28 + $0x10] sm:$0xff]  ;;  %377 = vperm.xlu0 %690, %v371_v11  }
  0x10   : > { %650 = vmatprep.subr.msk.mxu0 %vm274_vm1, %v260_v1  ;;  %v257_v4 = vld [vmem:[%s246_s28 + $0x8] sm:$0xff]  ;;  %v256_v5 = vld [vmem:[%s246_s28] sm:$0xff]  ;;  %v499_v18 = vld [vmem:[%s833_s4 + $0x10] sm:$0xff] }
  0x11   : > { %651 = vmatpush3.msk.msra.mxu0 %vm274_vm1, %v260_v1  ;;  %v526_v19 = vld [vmem:[%s834_s5 + $0x8] sm:$0xff]  ;;  %v525_v20 = vld [vmem:[%s834_s5] sm:$0xff]  ;;  %v528_v21 = vld [vmem:[%s834_s5 + $0x18] sm:$0xff] }
  0x12   : > { %652 = vmatprep.subr.mxu0 %v259_v2  ;;  %392 = vperm.xlu1 %691, %v374_v13   ;;  %v527_v22 = vld [vmem:[%s834_s5 + $0x10] sm:$0xff]  ;;  %v368_v31 = vld [vmem:[%s831_s2 + $0x8] sm:$0xff]  ;;  %v370_v33 = vld [vmem:[%s831_s2 + $0x18] sm:$0xff] }
  0x13   : > { %653 = vmatpush3.msra.mxu0 %v259_v2  ;;  %382 = vperm.xlu0 %690, %v372_v14   ;;  %v369_v32 = vld [vmem:[%s831_s2 + $0x10] sm:$0xff] }
  0x14   : > { %654 = vmatprep.subr.mxu0 %v258_v3 }
  0x15   : > { %655 = vmatpush3.msra.mxu0 %v258_v3 }
  0x16   : > { %656 = vmatprep.subr.mxu0 %v257_v4  ;;  %508 = vperm.xlu1 %691, %v498_v15  }
  0x17   : > { %657 = vmatpush3.msra.mxu0 %v257_v4  ;;  %503 = vperm.xlu0 %690, %v497_v16  }
  0x18   : > { %658 = vmatprep.subr.mxu0 %v256_v5 }
  0x19   : > { %659 = vmatpush3.msra.mxu0 %v256_v5 }
  0x1a   : > { %661 = vmatmul.mubr.msk.f32.vlgmr.msra.gmra.mxu0 %vm261_vm0, %v253_v6  ;;  %518 = vperm.xlu1 %691, %v500_v17  }
  0x1b   : > { %663 = vmatprep.mubr.msk.f32.mxu0 %vm261_vm0, %v254_v7  ;;  %513 = vperm.xlu0 %690, %v499_v18  }
  0x1e   : > { %664 = vmatmul.mubr.msk.f32.gmra.mxu0 %vm261_vm0, %v255_v8  ;;  %536 = vperm.xlu1 %691, %v526_v19  }
  0x1f   : > { %531 = vperm.xlu0 %690, %v525_v20  }
  0x22   : > { %546 = vperm.xlu1 %691, %v528_v21  }
  0x23   : > { %541 = vperm.xlu0 %690, %v527_v22  }
  0x89   : > { %v388_v34 = vpop.permute.xlu1 %387 }
  0x8a   : > { %v378_v35 = vpop.permute.xlu0 %377 }
  0x8d   : > { %v393_v36 = vpop.permute.xlu1 %392 }
  0x8e   : > { %v383_v37 = vpop.permute.xlu0 %382 }
  0x91   : > { %v509_v38 = vpop.permute.xlu1 %508 }
  0x92   : > { %v504_v39 = vpop.permute.xlu0 %503 }
  0x95   : > { %v519_v40 = vpop.permute.xlu1 %518 }
  0x96   : > { %v514_v41 = vpop.permute.xlu0 %513 }
  0x99   : > { %v537_v47 = vpop.permute.xlu1 %536 }
  0x9a   : > { %v532_v52 = vpop.permute.xlu0 %531 }
  0x9d   : > { %v547_v61 = vpop.permute.xlu1 %546 }
  0x9e   : > { %v542_v0 = vpop.permute.xlu0 %541 }
  0xda   : > { %v662_v23 = vpop.f32.mrf.mxu0 }
  0xdb   : > { %v364_v29 = vmax.f32 %v662_v23, 0.0 }
  0xdc   : > { %v344_v24 = vpop.f32.mrf.mxu0 }
  0xdd   : > { %v363_v30 = vmax.f32 %v344_v24, 0.0 }
  0xde   : > { %v665_v25 = vpop.f32.mrf.mxu0 }
  0xdf   : > { %v366_v26 = vmax.f32 %v665_v25, 0.0 }
  0xe0   : > { %v354_v27 = vpop.f32.mrf.mxu0 }
  0xe1   : > { %v365_v28 = vmax.f32 %v354_v27, 0.0  ;;  %666 = vmatprep.subr.mxu1 %v366_v26 }
  0xe2   : > { %667 = vmatpush3.msra.mxu1 %v366_v26 }
  0xe3   : > { %668 = vmatprep.subr.mxu1 %v365_v28 }
  0xe4   : > { %669 = vmatpush3.msra.mxu1 %v365_v28 }
  0xe5   : > { %670 = vmatprep.subr.mxu1 %v364_v29 }
  0xe6   : > { %671 = vmatpush3.msra.mxu1 %v364_v29 }
  0xe7   : > { %672 = vmatprep.subr.mxu1 %v363_v30 }
  0xe8   : > { %673 = vmatpush3.msra.mxu1 %v363_v30 }
  0xe9   : > { %675 = vmatmul.mubr.msk.f32.vlgmr.msra.gmra.mxu1 %vm395_vm2, %v368_v31 }
  0xea   : > { %677 = vmatprep.mubr.msk.f32.mxu1 %vm395_vm2, %v369_v32 }
  0xed   : > { %678 = vmatmul.mubr.msk.f32.gmra.mxu1 %vm395_vm2, %v370_v33 }
 0x1a9   : > { %v676_v42 = vpop.f32.mrf.mxu1 }
 0x1aa   : > { %v480_v43 = vadd.f32 %v676_v42, %v383_v37 }
 0x1ab   : > { %v474_v44 = vpop.f32.mrf.mxu1 }
 0x1ac   : > { %v494_v45 = vmax.f32 %v480_v43, 0.0  ;;  %v475_v46 = vadd.f32 %v474_v44, %v378_v35 }
 0x1ad   : > { %v679_v48 = vpop.f32.mrf.mxu1 }
 0x1ae   : > { %v522_v49 = vmul.f32 %v509_v38, %v494_v45  ;;  %v493_v50 = vmax.f32 %v475_v46, 0.0  ;;  %v490_v51 = vadd.f32 %v679_v48, %v393_v36 }
 0x1af   : > { %v484_v53 = vpop.f32.mrf.mxu1 }
 0x1b0   : > { %v550_v54 = vadd.f32 %v537_v47, %v522_v49  ;;  %v521_v55 = vmul.f32 %v504_v39, %v493_v50  ;;  %v496_v56 = vmax.f32 %v490_v51, 0.0  ;;  %v485_v57 = vadd.f32 %v484_v53, %v388_v34 }
 0x1b2   : > { %555 = vst.msk [vmem:[%s251_s26 + $0x8] sm:$0xff] %vm553_vm3, %v550_v54  ;;  %v549_v58 = vadd.f32 %v532_v52, %v521_v55  ;;  %v524_v59 = vmul.f32 %v519_v40, %v496_v56  ;;  %v495_v60 = vmax.f32 %v485_v57, 0.0 }
 0x1b4   : > { %554 = vst.msk [vmem:[%s251_s26] sm:$0xff] %vm553_vm3, %v549_v58  ;;  %v552_v62 = vadd.f32 %v547_v61, %v524_v59  ;;  %v523_v63 = vmul.f32 %v514_v41, %v495_v60 }
 0x1b6   : > { %557 = vst.msk [vmem:[%s251_s26 + $0x18] sm:$0xff] %vm553_vm3, %v552_v62  ;;  %v551_v1 = vadd.f32 %v542_v0, %v523_v63 }
 0x1b8   : > { %556 = vst.msk [vmem:[%s251_s26 + $0x10] sm:$0xff] %vm553_vm3, %v551_v1 }
 0x1b9 PF: > { %s16_s21 = sadd.s32 1, %s698_s21  }
 0x1ba   : > { %p13_p4 = scmp.ge.s32.totalorder %s16_s21, 4  }
 0x1bc   :  { %15 = sbr.rel (!%p13_p4) target bundleno = 1 (0x1), region = 74 }

// kernel: _lambda_.20
= control target key start
LH: loop header
LB: loop body
LE: loop exit
PB: predicated region body
PF: predicated region fallthrough
CT: control target
= control target key end

     0   :  { %s983_s27 = smov 0   ;;  %s1139_s0 = inlined_call_operand.vmem [shape: f32[2,288,64], index: 0, kind: input, shape index: {}]   ;;  %s1140_s1 = inlined_call_operand.vmem [shape: f32[2,4,64], index: 1, kind: input, shape index: {}]   ;;  %s1141_s2 = inlined_call_operand.vmem [shape: f32[4,288], index: 2, kind: input, shape index: {}]   ;;  %s1142_s3 = inlined_call_operand.vmem [shape: f32[4,288], index: 3, kind: input, shape index: {}]   ;;  %s1143_s4 = inlined_call_operand.vmem [shape: f32[4,1], index: 4, kind: input, shape index: {}, may-alias: {4,5}]   ;;  %s1144_s5 = inlined_call_operand.vmem [shape: f32[4,1], index: 5, kind: input, shape index: {}, may-alias: {4,5}]   ;;  %s1145_s6 = inlined_call_operand.vmem [shape: f32[4,1], index: 6, kind: input, shape index: {}]   ;;  %s1146_s7 = inlined_call_operand.vmem [shape: f32[2,4,64], index: 7, kind: output, shape index: {0}]   ;;  %s1147_s8 = inlined_call_operand.vmem [shape: f32[2,1,1], index: 8, kind: output, shape index: {1}]  }
   0x1 LB: > { %s793_s28 = sadd.s32 4294967295, %s933_s27   ;;  %p797_p0 = scmp.ge.s32.totalorder %s933_s27, 1  ;;  %s933_s27 = sphi %s983_s27, %s19_s27  }
   0x2   : > { %p274_p1 = scmp.lt.s32.totalorder %s933_s27, 3 }
   0x4   : > { %p275_p2 = pnand %p797_p0, %p274_p1 }
   0x5   : > { %p314_p3 = scmp.lt.s32.totalorder (!%p275_p2), %s793_s28, 1 }
   0x6   : > { %278 = sbr.rel (%p275_p2) target bundleno = 418 (0x1a2), region = 48 }
   0xb   : > { %v994_v0 = vld [vmem:[%s1141_s2] sm:$0xff]  ;;  %v935_v1 = vmov 0.0   ;;  %vm936_vm0 = vmmov 0   ;;  %s1149_s28 = smov (!%p314_p3, %s793_s28), 1  ;;  %v937_v4 = vmov 0   ;;  %vm378_vm1 = vcmask 261120  }
   0xc   : > { %885 = vmatprep.subr.mxu1 %v935_v1  ;;  %v376_v2 = vcombine.high %v994_v0, %v994_v0  ;;  %893 = vmatprep.mubr.msk.f32.mxu1 %vm936_vm0, %v935_v1  ;;  %v368_v3 = vld [vmem:[%s1143_s4] sm:$0xf]  ;;  %s907_s11 = smul.u32 288, %s1149_s28  ;;  %v331_v28 = vld [vmem:[%s1141_s2 + $0x8] sm:$0xf]  ;;  %vm688_vm2 = vcmask 519168   ;;  %s329_s14 = scalar_lea.vmem %s1147_s8, %s1149_s28 }
   0xd   : > { %919 = vset.pattern.permute.xlu0 %v937_v4  ;;  %920 = vset.pattern.permute.xlu1 %v937_v4  ;;  %v675_v5 = vld [vmem:[%s1145_s6] sm:$0xf]  ;;  %v522_v45 = vld [vmem:[%s1142_s3 + $0x8] sm:$0xf]  ;;  %vm693_vm3 = vcmask 1043456   ;;  %s799_s25 = sshll.u32 %s1149_s28, 2 }
   0xe   : > { %445 = vmatprep.mubr.f32.mxu0 %v376_v2  ;;  %371 = vperm.xlu0 %919, %v368_v3   ;;  %s1013_s16 = scalar_lea.vmem %s1139_s0, %s907_s11  ;;  %v521_v42 = vld [vmem:[%s1142_s3] sm:$0xff]  ;;  %s322_s30 = scalar_lea.vmem %s1140_s1, %s799_s25  ;;  %vm701_vm4 = vcmask 0  }
   0xf   : > { %v363_v6 = vld [vmem:[%s1013_s16 + $0xf8] sm:$0xff]  ;;  %v362_v8 = vld [vmem:[%s1013_s16 + $0xf0] sm:$0xff]  ;;  %v361_v10 = vld [vmem:[%s1013_s16 + $0xe8] sm:$0xff]  ;;  %v531_v44 = vcombine.high %v521_v42, %v521_v42  ;;  %s326_s11 = scalar_lea.vmem %s1146_s7, %s799_s25 }
  0x10   : > { %v347_v7 = vld [vmem:[%s1013_s16 + $0x78] sm:$0xff]  ;;  %805 = vmatprep.subr.mxu0 %v363_v6  ;;  %v346_v9 = vld [vmem:[%s1013_s16 + $0x70] sm:$0xff]  ;;  %v345_v11 = vld [vmem:[%s1013_s16 + $0x68] sm:$0xff] }
  0x11   : > { %806 = vmatpush3.msra.mxu0 %v347_v7  ;;  %v360_v12 = vld [vmem:[%s1013_s16 + $0xe0] sm:$0xff]  ;;  %v1026_v14 = vld [vmem:[%s1013_s16 + $0xd8] sm:$0xff]  ;;  %v1033_v16 = vld [vmem:[%s1013_s16 + $0xd0] sm:$0xff] }
  0x12   : > { %679 = vperm.xlu0 %919, %v675_v5   ;;  %807 = vmatprep.subr.mxu0 %v362_v8  ;;  %v1023_v13 = vld [vmem:[%s1013_s16 + $0x60] sm:$0xff]  ;;  %v1029_v15 = vld [vmem:[%s1013_s16 + $0x58] sm:$0xff]  ;;  %v1037_v17 = vld [vmem:[%s1013_s16 + $0x50] sm:$0xff] }
  0x13   : > { %808 = vmatpush3.msra.mxu0 %v346_v9  ;;  %v1041_v18 = vld [vmem:[%s1013_s16 + $0xc8] sm:$0xff]  ;;  %v1044_v19 = vld [vmem:[%s1013_s16 + $0x118] sm:$0xff]  ;;  %v1052_v21 = vld [vmem:[%s1013_s16 + $0x110] sm:$0xff] }
  0x14   : > { %809 = vmatprep.subr.mxu0 %v361_v10  ;;  %v1048_v20 = vld [vmem:[%s1013_s16 + $0x48] sm:$0xff]  ;;  %886 = vmatpush3.msra.mxu1 %v1044_v19  ;;  %v1056_v22 = vld [vmem:[%s1013_s16 + $0xc0] sm:$0xff]  ;;  %v355_v25 = vld [vmem:[%s1013_s16 + $0xb8] sm:$0xff] }
  0x15   : > { %810 = vmatpush3.msra.mxu0 %v345_v11  ;;  %887 = vmatprep.subr.mxu1 %v935_v1  ;;  %v1060_v23 = vld [vmem:[%s1013_s16 + $0x108] sm:$0xff]  ;;  %v340_v24 = vld [vmem:[%s1013_s16 + $0x40] sm:$0xff]  ;;  %v339_v27 = vld [vmem:[%s1013_s16 + $0x38] sm:$0xff] }
  0x16   : > { %811 = vmatprep.subr.mxu0 %v360_v12  ;;  %888 = vmatpush3.msra.mxu1 %v1052_v21  ;;  %v1069_v26 = vld [vmem:[%s1013_s16 + $0x100] sm:$0xff]  ;;  %v354_v29 = vld [vmem:[%s1013_s16 + $0xb0] sm:$0xff]  ;;  %v353_v31 = vld [vmem:[%s1013_s16 + $0xa8] sm:$0xff] }
  0x17   : > { %812 = vmatpush3.msra.mxu0 %v1023_v13  ;;  %889 = vmatprep.subr.mxu1 %v935_v1  ;;  %v338_v30 = vld [vmem:[%s1013_s16 + $0x30] sm:$0xff]  ;;  %v337_v32 = vld [vmem:[%s1013_s16 + $0x28] sm:$0xff]  ;;  %v352_v33 = vld [vmem:[%s1013_s16 + $0xa0] sm:$0xff] }
  0x18   : > { %813 = vmatprep.subr.mxu0 %v1026_v14  ;;  %890 = vmatpush3.msra.mxu1 %v1060_v23  ;;  %v336_v34 = vld [vmem:[%s1013_s16 + $0x20] sm:$0xff]  ;;  %v351_v35 = vld [vmem:[%s1013_s16 + $0x98] sm:$0xff]  ;;  %v350_v37 = vld [vmem:[%s1013_s16 + $0x90] sm:$0xff] }
  0x19   : > { %814 = vmatpush3.msra.mxu0 %v1029_v15  ;;  %891 = vmatprep.subr.mxu1 %v935_v1  ;;  %v335_v36 = vld [vmem:[%s1013_s16 + $0x18] sm:$0xff]  ;;  %v334_v38 = vld [vmem:[%s1013_s16 + $0x10] sm:$0xff]  ;;  %v349_v39 = vld [vmem:[%s1013_s16 + $0x88] sm:$0xff] }
  0x1a   : > { %815 = vmatprep.subr.mxu0 %v1033_v16  ;;  %892 = vmatpush3.msra.mxu1 %v1069_v26  ;;  %v333_v40 = vld [vmem:[%s1013_s16 + $0x8] sm:$0xff]  ;;  %v348_v41 = vld [vmem:[%s1013_s16 + $0x80] sm:$0xff] }
  0x1b   : > { %816 = vmatpush3.msra.mxu0 %v1037_v17  ;;  %894 = vmatmul.mubr.msk.f32.vlgmr.msra.gmra.mxu1 %vm378_vm1, %v331_v28  ;;  %v332_v43 = vld [vmem:[%s1013_s16] sm:$0xff] }
  0x1c   : > { %817 = vmatprep.subr.mxu0 %v1041_v18  ;;  %845 = vmatprep.subr.mxu1 %v363_v6  ;;  %v523_v58 = vld [vmem:[%s1144_s5] sm:$0xf] }
  0x1d   : > { %818 = vmatpush3.msra.mxu0 %v1048_v20  ;;  %846 = vmatpush3.msra.mxu1 %v347_v7 }
  0x1e   : > { %819 = vmatprep.subr.mxu0 %v1056_v22  ;;  %847 = vmatprep.subr.mxu1 %v362_v8  ;;  %v683_v8 = vld [vmem:[%s322_s30] sm:$0xf] }
  0x1f   : > { %820 = vmatpush3.msra.mxu0 %v340_v24  ;;  %848 = vmatpush3.msra.mxu1 %v346_v9 }
  0x20   : > { %821 = vmatprep.subr.mxu0 %v355_v25  ;;  %849 = vmatprep.subr.mxu1 %v361_v10 }
  0x21   : > { %822 = vmatpush3.msra.mxu0 %v339_v27  ;;  %850 = vmatpush3.msra.mxu1 %v345_v11 }
  0x22   : > { %823 = vmatprep.subr.mxu0 %v354_v29  ;;  %851 = vmatprep.subr.mxu1 %v360_v12 }
  0x23   : > { %824 = vmatpush3.msra.mxu0 %v338_v30  ;;  %852 = vmatpush3.msra.mxu1 %v1023_v13 }
  0x24   : > { %825 = vmatprep.subr.mxu0 %v353_v31  ;;  %853 = vmatprep.subr.mxu1 %v1026_v14 }
  0x25   : > { %826 = vmatpush3.msra.mxu0 %v337_v32  ;;  %854 = vmatpush3.msra.mxu1 %v1029_v15 }
  0x26   : > { %827 = vmatprep.subr.mxu0 %v352_v33  ;;  %855 = vmatprep.subr.mxu1 %v1033_v16 }
  0x27   : > { %828 = vmatpush3.msra.mxu0 %v336_v34  ;;  %856 = vmatpush3.msra.mxu1 %v1037_v17 }
  0x28   : > { %829 = vmatprep.subr.mxu0 %v351_v35  ;;  %857 = vmatprep.subr.mxu1 %v1041_v18 }
  0x29   : > { %830 = vmatpush3.msra.mxu0 %v335_v36  ;;  %858 = vmatpush3.msra.mxu1 %v1048_v20 }
  0x2a   : > { %831 = vmatprep.subr.mxu0 %v350_v37  ;;  %859 = vmatprep.subr.mxu1 %v1056_v22 }
  0x2b   : > { %832 = vmatpush3.msra.mxu0 %v334_v38  ;;  %860 = vmatpush3.msra.mxu1 %v340_v24 }
  0x2c   : > { %833 = vmatprep.subr.mxu0 %v349_v39  ;;  %861 = vmatprep.subr.mxu1 %v355_v25 }
  0x2d   : > { %834 = vmatpush3.msra.mxu0 %v333_v40  ;;  %599 = vmatprep.mubr.f32.mxu1 %v531_v44 }
  0x2e   : > { %835 = vmatprep.subr.mxu0 %v348_v41  ;;  %862 = vmatpush3.msra.mxu1 %v339_v27 }
  0x2f   : > { %836 = vmatpush3.msra.mxu0 %v332_v43  ;;  %863 = vmatprep.subr.mxu1 %v354_v29 }
  0x30   : > { %446 = vmatmul.mubr.f32.vlgmr.msra.gmra.mxu0 %v994_v0  ;;  %896 = vmatprep.subr.mxu0 %v935_v1 }
  0x31   : > { %897 = vmatpush3.msra.mxu0 %v1044_v19  ;;  %864 = vmatpush3.msra.mxu1 %v338_v30 }
  0x32   : > { %898 = vmatprep.subr.mxu0 %v935_v1  ;;  %865 = vmatprep.subr.mxu1 %v353_v31 }
  0x33   : > { %899 = vmatpush3.msra.mxu0 %v1052_v21  ;;  %866 = vmatpush3.msra.mxu1 %v337_v32 }
  0x34   : > { %900 = vmatprep.subr.mxu0 %v935_v1  ;;  %867 = vmatprep.subr.mxu1 %v352_v33 }
  0x35   : > { %901 = vmatpush3.msra.mxu0 %v1060_v23  ;;  %868 = vmatpush3.msra.mxu1 %v336_v34 }
  0x36   : > { %902 = vmatprep.subr.mxu0 %v935_v1  ;;  %869 = vmatprep.subr.mxu1 %v351_v35 }
  0x37   : > { %903 = vmatpush3.msra.mxu0 %v1069_v26  ;;  %904 = vmatprep.mubr.msk.f32.mxu0 %vm936_vm0, %v935_v1 }
  0x38   : > { %870 = vmatpush3.msra.mxu1 %v335_v36  ;;  %905 = vmatmul.mubr.msk.f32.vlgmr.msra.gmra.mxu0 %vm378_vm1, %v522_v45 }
  0x39   : > { %871 = vmatprep.subr.mxu1 %v350_v37 }
  0x3a   : > { %872 = vmatpush3.msra.mxu1 %v334_v38 }
  0x3b   : > { %873 = vmatprep.subr.mxu1 %v349_v39 }
  0x3c   : > { %874 = vmatpush3.msra.mxu1 %v333_v40 }
  0x3d   : > { %875 = vmatprep.subr.mxu1 %v348_v41 }
  0x3e   : > { %876 = vmatpush3.msra.mxu1 %v332_v43 }
  0x3f   : > { %600 = vmatmul.mubr.f32.vlgmr.msra.gmra.mxu1 %v521_v42 }
  0x89   : > { %v372_v51 = vpop.permute.xlu0 %371 }
  0x8d   : > { %v680_v55 = vpop.permute.xlu0 %679 }
  0xdb   : > { %v517_v46 = vpop.f32.mrf.mxu1 }
  0xdd   : > { %v895_v47 = vpop.f32.mrf.mxu1 }
  0xf0   : > { %v837_v48 = vpop.f32.mrf.mxu0 }
  0xf2   : > { %v838_v49 = vpop.f32.mrf.mxu0 }
  0xf3   : > { %v839_v50 = vadd.f32 %v838_v49, %v837_v48 }
  0xf5   : > { %v448_v52 = vadd.f32 %v839_v50, %v372_v51 }
  0xf7   : > { %v518_v53 = vadd.f32 %v517_v46, %v448_v52 }
  0xf8   : > { %v671_v59 = vpop.f32.mrf.mxu0 }
  0xf9   : > { %923 = vtanh.f32 %v518_v53 }
  0xfa   : > { %v906_v60 = vpop.f32.mrf.mxu0 }
  0xff   : > { %v877_v62 = vpop.f32.mrf.mxu1 }
 0x101   : > { %v878_v63 = vpop.f32.mrf.mxu1 }
 0x102   : > { %v879_v2 = vadd.f32 %v878_v63, %v877_v62 }
 0x106   : > { %v924_v54 = vpop.eup %923 }
 0x107   : > { %v682_v56 = vmul.f32 %v924_v54, %v680_v55 }
 0x109   : > { %v690_v57 = vsel %vm688_vm2, %v682_v56, 0.0  ;;  %v685_v61 = vmul.f32 1.442695, %v682_v56 }
 0x10a   : > { %691 = vadd.xlane.f32.xlu1 %v690_v57 }
 0x10b   : > { %925 = vpow2.f32 %v685_v61 }
 0x118   : > { %v926_v12 = vpop.eup %925 }
 0x11b   : > { %526 = vperm.xlu1 %920, %v523_v58  }
 0x193   : > { %v692_v0 = vpop.xlane.xlu1 %691 }
 0x194   : > { %v694_v1 = vsel %vm693_vm3, %v692_v0, 0.0 }
 0x195   : > { %v695_v3 = vrot.slane %v694_v1, 4 }
 0x197   : > { %v696_v4 = vadd.f32 %v695_v3, %v694_v1  ;;  %v527_v5 = vpop.permute.xlu1 %526 }
 0x198   : > { %v602_v6 = vadd.f32 %v879_v2, %v527_v5 }
 0x199   : > { %v697_v7 = vrot.slane %v696_v4, 2 }
 0x19a   : > { %v672_v9 = vadd.f32 %v671_v59, %v602_v6 }
 0x19b   : > { %v698_v10 = vadd.f32 %v697_v7, %v696_v4 }
 0x19c   : > { %v684_v11 = vadd.f32 %v683_v8, %v672_v9 }
 0x19d   : > { %v699_v13 = vrot.slane %v698_v10, 1 }
 0x19e   : > { %v687_v14 = vmul.f32 %v926_v12, %v684_v11 }
 0x19f   : > { %v700_v15 = vadd.f32 %v699_v13, %v698_v10 }
 0x1a0   : > { %689 = vst.msk [vmem:[%s326_s11] sm:$0xf] %vm688_vm2, %v687_v14 }
 0x1a1   : > { %702 = vst.msk [vmem:[%s329_s14] sm:$0x1] %vm701_vm4, %v700_v15 }
 0x1a2 PF: > { %s19_s27 = sadd.s32 1, %s933_s27  }
 0x1a3   : > { %p16_p4 = scmp.ge.s32.totalorder %s19_s27, 4  }
 0x1a5   :  { %18 = sbr.rel (!%p16_p4) target bundleno = 1 (0x1), region = 93 }

</bundles_post_ra>
